<compile_context>
chip_gen: v7x
topology: tpu7x:2x2x1
jax: 0.10.0
libtpu: 0.0.40
codegen_flags: <defaults>
</compile_context>

<pallas_src>
import jax
import jax.numpy as jnp
from jax import lax
from jax.experimental import pallas as pl
from jax.experimental.pallas import tpu as pltpu

HIDDEN_SIZE = 64
Types = [11, 11, 10, 0, 0, 10, 0]
nAgents = len(Types)
INPUT_SIZE = 2 * nAgents          # 14
NUM_LAYERS = 2
nCtrb = 2
OUTPUT_SIZE = 2 * nCtrb           # 4
# TODO(synk): MAX_Ctrl is undefined in the original snippet; fixed deterministically.
MAX_CTRL = 1.0

# bf16 operands feed the MXU natively on v6e/v7x and halve weight traffic;
# accumulation stays f32 (preferred_element_type) and all elementwise/gate/cell
# math stays f32 (no hidden bf16 converts on the v5e VPU/EUP).
MATMUL_DTYPE = jnp.bfloat16


def _rnn_kernel(x_ref, h0_ref, c0_ref,
                wih0_ref, whh0_ref, b0_ref,
                wih1_ref, whh1_ref, b1_ref,
                wout_ref, bout_ref,
                out_ref, hn_ref, cn_ref,
                xproj_ref, h1seq_ref):
    S, B, _ = x_ref.shape
    H = HIDDEN_SIZE

    whh0 = whh0_ref[...]
    wih1 = wih1_ref[...]
    whh1 = whh1_ref[...]
    # Hoist bias broadcast out of the loop (JAX does not CSE broadcast_in_dim).
    b1 = jnp.broadcast_to(b1_ref[...], (B, 4 * H))

    # ---- hoisted layer-0 input projection: no sequential dependence ---------
    x_all = x_ref[...].reshape(S * B, INPUT_SIZE).astype(MATMUL_DTYPE)
    xproj = jnp.dot(x_all, wih0_ref[...],
                    preferred_element_type=jnp.float32) + b0_ref[...]
    xproj_ref[...] = xproj.reshape(S, B, 4 * H)

    # Lane mask selecting the tanh gate g (PyTorch gate order i, f, g, o).
    lane = lax.broadcasted_iota(jnp.int32, (B, 4 * H), 1)
    g_mask = (lane >= 2 * H) & (lane < 3 * H)

    def activate(gates):
        # Full-width sigmoid + tanh (EUP), blended with a lane mask — avoids
        # per-gate transcendentals on 64-lane-offset slices.
        return jnp.where(g_mask, jnp.tanh(gates), jax.nn.sigmoid(gates))

    def apply_gates(act, c):
        i = act[:, 0 * H:1 * H]
        f = act[:, 1 * H:2 * H]
        g = act[:, 2 * H:3 * H]
        o = act[:, 3 * H:4 * H]
        c_new = f * c + i * g
        h_new = o * jnp.tanh(c_new)
        return h_new, c_new

    def body(t, carry):
        h_l0, c_l0, h_l1, c_l1 = carry
        # Layer 0: only the recurrent matmul remains in the loop.
        g0 = xproj_ref[t] + jnp.dot(h_l0.astype(MATMUL_DTYPE), whh0,
                                    preferred_element_type=jnp.float32)
        h_l0, c_l0 = apply_gates(activate(g0), c_l0)
        # TODO(synk): nn.LSTM's dropout=0.5 between layers only applies in
        # training mode; eval-mode forward semantics (no dropout) implemented.
        g1 = (jnp.dot(h_l0.astype(MATMUL_DTYPE), wih1,
                      preferred_element_type=jnp.float32)
              + jnp.dot(h_l1.astype(MATMUL_DTYPE), whh1,
                        preferred_element_type=jnp.float32)
              + b1)
        h_l1, c_l1 = apply_gates(activate(g1), c_l1)
        h1seq_ref[t] = h_l1            # defer output projection to after loop
        return (h_l0, c_l0, h_l1, c_l1)

    carry0 = (h0_ref[0], c0_ref[0], h0_ref[1], c0_ref[1])
    # S is static -> fully unroll so the LLO scheduler can overlap MXU pushes of
    # step t+1 with the VPU/EUP gate math of step t.
    h0f, c0f, h1f, c1f = lax.fori_loop(0, S, body, carry0, unroll=True)
    hn_ref[0] = h0f
    hn_ref[1] = h1f
    cn_ref[0] = c0f
    cn_ref[1] = c1f

    # ---- hoisted output Linear + tansig: one bulk matmul + one bulk store ----
    h_all = h1seq_ref[...].reshape(S * B, H).astype(MATMUL_DTYPE)
    y = jnp.dot(h_all, wout_ref[...],
                preferred_element_type=jnp.float32) + bout_ref[...]
    # tansig(y, -MAX_CTRL, MAX_CTRL) == MAX_CTRL * tanh(y) (symmetric bounds).
    out_ref[...] = (MAX_CTRL * jnp.tanh(y)).reshape(out_ref.shape).astype(out_ref.dtype)


def init_params(key):
    """Deterministic parameter init matching nn.LSTM / nn.Linear shapes."""
    k = 1.0 / jnp.sqrt(jnp.float32(HIDDEN_SIZE))
    keys = jax.random.split(key, 10)

    def u(kk, shape):
        return jax.random.uniform(kk, shape, jnp.float32, -k, k)

    wih0 = u(keys[0], (4 * HIDDEN_SIZE, INPUT_SIZE))     # weight_ih_l0
    whh0 = u(keys[1], (4 * HIDDEN_SIZE, HIDDEN_SIZE))    # weight_hh_l0
    bih0 = u(keys[2], (4 * HIDDEN_SIZE,))
    bhh0 = u(keys[3], (4 * HIDDEN_SIZE,))
    wih1 = u(keys[4], (4 * HIDDEN_SIZE, HIDDEN_SIZE))    # weight_ih_l1
    whh1 = u(keys[5], (4 * HIDDEN_SIZE, HIDDEN_SIZE))    # weight_hh_l1
    bih1 = u(keys[6], (4 * HIDDEN_SIZE,))
    bhh1 = u(keys[7], (4 * HIDDEN_SIZE,))
    wout = u(keys[8], (OUTPUT_SIZE, HIDDEN_SIZE))        # Linear weight
    bout = u(keys[9], (OUTPUT_SIZE,))                    # Linear bias
    # Pre-transpose for x @ W layout, fuse the two LSTM biases, store matmul
    # weights in bf16 (accumulation stays f32 in-kernel).
    return {
        "wih0": wih0.T.astype(MATMUL_DTYPE),
        "whh0": whh0.T.astype(MATMUL_DTYPE),
        "b0": (bih0 + bhh0)[None, :],
        "wih1": wih1.T.astype(MATMUL_DTYPE),
        "whh1": whh1.T.astype(MATMUL_DTYPE),
        "b1": (bih1 + bhh1)[None, :],
        "wout": wout.T.astype(MATMUL_DTYPE),
        "bout": bout[None, :],
    }


def rnn_forward(params, x, h_state):
    """x: (B, S, INPUT_SIZE); h_state = (h0, c0), each (NUM_LAYERS, B, HIDDEN_SIZE)."""
    h0, c0 = h_state
    B, S, _ = x.shape
    # Pad batch to a sublane multiple (>=8): B=2 would use 2/8 sublanes of every
    # activation vreg and starve the MXU rows.
    Bp = max(8, ((B + 7) // 8) * 8)
    pad = Bp - B

    x_tm = jnp.transpose(x, (1, 0, 2)).astype(jnp.float32)  # time-major (S, B, IN)
    h0 = h0.astype(jnp.float32)
    c0 = c0.astype(jnp.float32)
    if pad:
        x_tm = jnp.pad(x_tm, ((0, 0), (0, pad), (0, 0)))
        h0 = jnp.pad(h0, ((0, 0), (0, pad), (0, 0)))
        c0 = jnp.pad(c0, ((0, 0), (0, pad), (0, 0)))

    # TODO(synk): for long S (or many batched sequences) add a grid over time /
    # batch chunks with BlockSpec pipelining and dimension_semantics=("parallel",)
    # to shard across v7x's two TensorCores; at these sizes everything fits VMEM.
    vmem = pl.BlockSpec(memory_space=pltpu.MemorySpace.VMEM)
    out_shapes = (
        jax.ShapeDtypeStruct((S, Bp, OUTPUT_SIZE), jnp.float32),
        jax.ShapeDtypeStruct((NUM_LAYERS, Bp, HIDDEN_SIZE), jnp.float32),
        jax.ShapeDtypeStruct((NUM_LAYERS, Bp, HIDDEN_SIZE), jnp.float32),
    )
    outs_tm, hn, cn = pl.pallas_call(
        _rnn_kernel,
        out_shape=out_shapes,
        in_specs=[vmem] * 11,
        out_specs=(vmem, vmem, vmem),
        scratch_shapes=[
            pltpu.VMEM((S, Bp, 4 * HIDDEN_SIZE), jnp.float32),  # hoisted x-proj
            pltpu.VMEM((S, Bp, HIDDEN_SIZE), jnp.float32),      # per-step h_l1
        ],
    )(x_tm, h0, c0,
      params["wih0"], params["whh0"], params["b0"],
      params["wih1"], params["whh1"], params["b1"],
      params["wout"], params["bout"])

    outs = jnp.transpose(outs_tm[:, :B, :], (1, 0, 2))
    return outs, (hn[:, :B, :], cn[:, :B, :])


def rnn_reference(params, x, h_state):
    """Pure-JAX reference (mirrors the bf16-operand / f32-accumulate numerics)."""
    h0, c0 = h_state
    H = HIDDEN_SIZE

    def mm(a, w):
        return jnp.dot(a.astype(MATMUL_DTYPE), w, preferred_element_type=jnp.float32)

    def cell(xt, h, c, wih, whh, b):
        gates = mm(xt, wih) + mm(h, whh) + b
        i = jax.nn.sigmoid(gates[:, :H]); f = jax.nn.sigmoid(gates[:, H:2 * H])
        g = jnp.tanh(gates[:, 2 * H:3 * H]); o = jax.nn.sigmoid(gates[:, 3 * H:])
        c = f * c + i * g
        return o * jnp.tanh(c), c

    def step(carry, xt):
        h_l0, c_l0, h_l1, c_l1 = carry
        h_l0, c_l0 = cell(xt, h_l0, c_l0, params["wih0"], params["whh0"], params["b0"])
        h_l1, c_l1 = cell(h_l0, h_l1, c_l1, params["wih1"], params["whh1"], params["b1"])
        y = mm(h_l1, params["wout"]) + params["bout"]
        # General tansig form (verifies the kernel's symmetric-bounds shortcut).
        u_min, u_max = -MAX_CTRL, MAX_CTRL
        out = u_min + (u_max - u_min) * (jnp.tanh(y) + 1.0) / 2.0
        return (h_l0, c_l0, h_l1, c_l1), out

    carry0 = (h0[0], c0[0], h0[1], c0[1])
    carry, outs = lax.scan(step, carry0, jnp.transpose(x, (1, 0, 2)))
    hn = jnp.stack([carry[0], carry[2]])
    cn = jnp.stack([carry[1], carry[3]])
    return jnp.transpose(outs, (1, 0, 2)), (hn, cn)


if __name__ == "__main__":
    key = jax.random.PRNGKey(0)
    pkey, xkey, hkey, ckey = jax.random.split(key, 4)
    params = init_params(pkey)

    B, S = 2, 8
    x = jax.random.normal(xkey, (B, S, INPUT_SIZE), jnp.float32)
    h0 = 0.1 * jax.random.normal(hkey, (NUM_LAYERS, B, HIDDEN_SIZE), jnp.float32)
    c0 = 0.1 * jax.random.normal(ckey, (NUM_LAYERS, B, HIDDEN_SIZE), jnp.float32)

    outs, (hn, cn) = rnn_forward(params, x, (h0, c0))
    jax.block_until_ready((outs, hn, cn))

    ref_outs, (ref_hn, ref_cn) = rnn_reference(params, x, (h0, c0))
    assert outs.shape == (B, S, OUTPUT_SIZE)
    assert hn.shape == (NUM_LAYERS, B, HIDDEN_SIZE)
    assert cn.shape == (NUM_LAYERS, B, HIDDEN_SIZE)
    assert jnp.allclose(outs, ref_outs, atol=1e-3, rtol=1e-3)
    assert jnp.allclose(hn, ref_hn, atol=1e-3, rtol=1e-3)
    assert jnp.allclose(cn, ref_cn, atol=1e-3, rtol=1e-3)
    print("KERNEL_OK")
</pallas_src>

<mosaic_0001>
module attributes {stable_mosaic.version = 11 : i64} {
  func.func @_rnn_kernel(%arg0: memref<8x8x14xf32, #tpu.memory_space<vmem>>, %arg1: memref<2x8x64xf32, #tpu.memory_space<vmem>>, %arg2: memref<2x8x64xf32, #tpu.memory_space<vmem>>, %arg3: memref<14x256xbf16, #tpu.memory_space<vmem>>, %arg4: memref<64x256xbf16, #tpu.memory_space<vmem>>, %arg5: memref<1x256xf32, #tpu.memory_space<vmem>>, %arg6: memref<64x256xbf16, #tpu.memory_space<vmem>>, %arg7: memref<64x256xbf16, #tpu.memory_space<vmem>>, %arg8: memref<1x256xf32, #tpu.memory_space<vmem>>, %arg9: memref<64x4xbf16, #tpu.memory_space<vmem>>, %arg10: memref<1x4xf32, #tpu.memory_space<vmem>>, %arg11: memref<8x8x4xf32, #tpu.memory_space<vmem>>, %arg12: memref<2x8x64xf32, #tpu.memory_space<vmem>>, %arg13: memref<2x8x64xf32, #tpu.memory_space<vmem>>, %arg14: memref<8x8x256xf32, #tpu.memory_space<vmem>>, %arg15: memref<8x8x64xf32, #tpu.memory_space<vmem>>) attributes {dimension_semantics = [], scalar_prefetch = 0 : i64, scratch_operands = 2 : i64, tpu.core_type = #tpu.core_type<tc>} {
    %c0 = arith.constant 0 : index
    %c0_0 = arith.constant 0 : index
    %0 = vector.load %arg4[%c0, %c0_0] : memref<64x256xbf16, #tpu.memory_space<vmem>>, vector<64x256xbf16>
    %c0_1 = arith.constant 0 : index
    %c0_2 = arith.constant 0 : index
    %1 = vector.load %arg6[%c0_1, %c0_2] : memref<64x256xbf16, #tpu.memory_space<vmem>>, vector<64x256xbf16>
    %c0_3 = arith.constant 0 : index
    %c0_4 = arith.constant 0 : index
    %2 = vector.load %arg7[%c0_3, %c0_4] : memref<64x256xbf16, #tpu.memory_space<vmem>>, vector<64x256xbf16>
    %c0_5 = arith.constant 0 : index
    %c0_6 = arith.constant 0 : index
    %3 = vector.load %arg8[%c0_5, %c0_6] : memref<1x256xf32, #tpu.memory_space<vmem>>, vector<1x256xf32>
    %4 = vector.shape_cast %3 : vector<1x256xf32> to vector<1x256xf32>
    %5 = vector.broadcast %4 : vector<1x256xf32> to vector<8x256xf32>
    %c0_7 = arith.constant 0 : index
    %c0_8 = arith.constant 0 : index
    %c0_9 = arith.constant 0 : index
    %6 = vector.load %arg0[%c0_7, %c0_8, %c0_9] : memref<8x8x14xf32, #tpu.memory_space<vmem>>, vector<8x8x14xf32>
    %7 = vector.shape_cast %6 : vector<8x8x14xf32> to vector<64x14xf32>
    %8 = arith.truncf %7 : vector<64x14xf32> to vector<64x14xbf16>
    %c0_10 = arith.constant 0 : index
    %c0_11 = arith.constant 0 : index
    %9 = vector.load %arg3[%c0_10, %c0_11] : memref<14x256xbf16, #tpu.memory_space<vmem>>, vector<14x256xbf16>
    %cst = arith.constant dense<0.000000e+00> : vector<64x256xf32>
    %10 = tpu.matmul %8, %9, %cst {dimension_numbers = #tpu.dot_dimension_numbers<[1], [0], [0], [1], [0, 0, 1, 1], [], []>} : vector<64x14xbf16>, vector<14x256xbf16>, vector<64x256xf32> -> vector<64x256xf32>
    %c0_12 = arith.constant 0 : index
    %c0_13 = arith.constant 0 : index
    %11 = vector.load %arg5[%c0_12, %c0_13] : memref<1x256xf32, #tpu.memory_space<vmem>>, vector<1x256xf32>
    %12 = vector.broadcast %11 : vector<1x256xf32> to vector<64x256xf32>
    %13 = arith.addf %10, %12 : vector<64x256xf32>
    %14 = vector.shape_cast %13 : vector<64x256xf32> to vector<8x8x256xf32>
    %c0_14 = arith.constant 0 : index
    %c0_15 = arith.constant 0 : index
    %c0_16 = arith.constant 0 : index
    %15 = vector.load %arg14[%c0_14, %c0_15, %c0_16] : memref<8x8x256xf32, #tpu.memory_space<vmem>>, vector<8x8x256xf32>
    tpu.vector_store %arg14[%c0_14, %c0_15, %c0_16], %14 {strides = array<i32>} : memref<8x8x256xf32, #tpu.memory_space<vmem>>, vector<8x8x256xf32>,
    %16 = tpu.iota {dimensions = array<i32: 1>} : vector<8x256xi32>
    %c128_i32 = arith.constant 128 : i32
    %17 = vector.broadcast %c128_i32 : i32 to vector<8x256xi32>
    %18 = arith.cmpi sge, %16, %17 : vector<8x256xi32>
    %c192_i32 = arith.constant 192 : i32
    %19 = vector.broadcast %c192_i32 : i32 to vector<8x256xi32>
    %20 = arith.cmpi slt, %16, %19 : vector<8x256xi32>
    %21 = arith.andi %18, %20 : vector<8x256xi1>
    %c0_17 = arith.constant 0 : index
    %c0_18 = arith.constant 0 : index
    %c0_19 = arith.constant 0 : index
    %22 = vector.load %arg1[%c0_17, %c0_18, %c0_19] : memref<2x8x64xf32, #tpu.memory_space<vmem>>, vector<1x8x64xf32>
    %23 = vector.shape_cast %22 : vector<1x8x64xf32> to vector<8x64xf32>
    %c0_20 = arith.constant 0 : index
    %c0_21 = arith.constant 0 : index
    %c0_22 = arith.constant 0 : index
    %24 = vector.load %arg2[%c0_20, %c0_21, %c0_22] : memref<2x8x64xf32, #tpu.memory_space<vmem>>, vector<1x8x64xf32>
    %25 = vector.shape_cast %24 : vector<1x8x64xf32> to vector<8x64xf32>
    %c1 = arith.constant 1 : index
    %c0_23 = arith.constant 0 : index
    %c0_24 = arith.constant 0 : index
    %26 = vector.load %arg1[%c1, %c0_23, %c0_24] : memref<2x8x64xf32, #tpu.memory_space<vmem>>, vector<1x8x64xf32>
    %27 = vector.shape_cast %26 : vector<1x8x64xf32> to vector<8x64xf32>
    %c1_25 = arith.constant 1 : index
    %c0_26 = arith.constant 0 : index
    %c0_27 = arith.constant 0 : index
    %28 = vector.load %arg2[%c1_25, %c0_26, %c0_27] : memref<2x8x64xf32, #tpu.memory_space<vmem>>, vector<1x8x64xf32>
    %29 = vector.shape_cast %28 : vector<1x8x64xf32> to vector<8x64xf32>
    %c0_i32 = arith.constant 0 : i32
    %30 = arith.index_cast %c0_i32 : i32 to index
    %c0_28 = arith.constant 0 : index
    %c0_29 = arith.constant 0 : index
    %31 = vector.load %arg14[%30, %c0_28, %c0_29] : memref<8x8x256xf32, #tpu.memory_space<vmem>>, vector<1x8x256xf32>
    %32 = vector.shape_cast %31 : vector<1x8x256xf32> to vector<8x256xf32>
    %33 = arith.truncf %23 : vector<8x64xf32> to vector<8x64xbf16>
    %cst_30 = arith.constant dense<0.000000e+00> : vector<8x256xf32>
    %34 = tpu.matmul %33, %0, %cst_30 {dimension_numbers = #tpu.dot_dimension_numbers<[1], [0], [0], [1], [0, 0, 1, 1], [], []>} : vector<8x64xbf16>, vector<64x256xbf16>, vector<8x256xf32> -> vector<8x256xf32>
    %35 = arith.addf %32, %34 : vector<8x256xf32>
    %36 = math.tanh %35 : vector<8x256xf32>
    %37 = arith.negf %35 : vector<8x256xf32>
    %38 = math.exp %37 : vector<8x256xf32>
    %cst_31 = arith.constant 1.000000e+00 : f32
    %39 = vector.broadcast %cst_31 : f32 to vector<8x256xf32>
    %40 = arith.addf %39, %38 : vector<8x256xf32>
    %41 = arith.divf %39, %40 : vector<8x256xf32>
    %42 = arith.select %21, %36, %41 : vector<8x256xi1>, vector<8x256xf32>
    %43 = vector.extract_strided_slice %42 {offsets = [0, 0], sizes = [8, 64], strides = [1, 1]} : vector<8x256xf32> to vector<8x64xf32>
    %44 = vector.extract_strided_slice %42 {offsets = [0, 64], sizes = [8, 64], strides = [1, 1]} : vector<8x256xf32> to vector<8x64xf32>
    %45 = vector.extract_strided_slice %42 {offsets = [0, 128], sizes = [8, 64], strides = [1, 1]} : vector<8x256xf32> to vector<8x64xf32>
    %46 = vector.extract_strided_slice %42 {offsets = [0, 192], sizes = [8, 64], strides = [1, 1]} : vector<8x256xf32> to vector<8x64xf32>
    %47 = arith.mulf %44, %25 : vector<8x64xf32>
    %48 = arith.mulf %43, %45 : vector<8x64xf32>
    %49 = arith.addf %47, %48 : vector<8x64xf32>
    %50 = math.tanh %49 : vector<8x64xf32>
    %51 = arith.mulf %46, %50 : vector<8x64xf32>
    %52 = arith.truncf %51 : vector<8x64xf32> to vector<8x64xbf16>
    %cst_32 = arith.constant dense<0.000000e+00> : vector<8x256xf32>
    %53 = tpu.matmul %52, %1, %cst_32 {dimension_numbers = #tpu.dot_dimension_numbers<[1], [0], [0], [1], [0, 0, 1, 1], [], []>} : vector<8x64xbf16>, vector<64x256xbf16>, vector<8x256xf32> -> vector<8x256xf32>
    %54 = arith.truncf %27 : vector<8x64xf32> to vector<8x64xbf16>
    %cst_33 = arith.constant dense<0.000000e+00> : vector<8x256xf32>
    %55 = tpu.matmul %54, %2, %cst_33 {dimension_numbers = #tpu.dot_dimension_numbers<[1], [0], [0], [1], [0, 0, 1, 1], [], []>} : vector<8x64xbf16>, vector<64x256xbf16>, vector<8x256xf32> -> vector<8x256xf32>
    %56 = arith.addf %53, %55 : vector<8x256xf32>
    %57 = arith.addf %56, %5 : vector<8x256xf32>
    %58 = math.tanh %57 : vector<8x256xf32>
    %59 = arith.negf %57 : vector<8x256xf32>
    %60 = math.exp %59 : vector<8x256xf32>
    %cst_34 = arith.constant 1.000000e+00 : f32
    %61 = vector.broadcast %cst_34 : f32 to vector<8x256xf32>
    %62 = arith.addf %61, %60 : vector<8x256xf32>
    %63 = arith.divf %61, %62 : vector<8x256xf32>
    %64 = arith.select %21, %58, %63 : vector<8x256xi1>, vector<8x256xf32>
    %65 = vector.extract_strided_slice %64 {offsets = [0, 0], sizes = [8, 64], strides = [1, 1]} : vector<8x256xf32> to vector<8x64xf32>
    %66 = vector.extract_strided_slice %64 {offsets = [0, 64], sizes = [8, 64], strides = [1, 1]} : vector<8x256xf32> to vector<8x64xf32>
    %67 = vector.extract_strided_slice %64 {offsets = [0, 128], sizes = [8, 64], strides = [1, 1]} : vector<8x256xf32> to vector<8x64xf32>
    %68 = vector.extract_strided_slice %64 {offsets = [0, 192], sizes = [8, 64], strides = [1, 1]} : vector<8x256xf32> to vector<8x64xf32>
    %69 = arith.mulf %66, %29 : vector<8x64xf32>
    %70 = arith.mulf %65, %67 : vector<8x64xf32>
    %71 = arith.addf %69, %70 : vector<8x64xf32>
    %72 = math.tanh %71 : vector<8x64xf32>
    %73 = arith.mulf %68, %72 : vector<8x64xf32>
    %74 = arith.index_cast %c0_i32 : i32 to index
    %c0_35 = arith.constant 0 : index
    %c0_36 = arith.constant 0 : index
    %75 = vector.load %arg15[%74, %c0_35, %c0_36] : memref<8x8x64xf32, #tpu.memory_space<vmem>>, vector<1x8x64xf32>
    %76 = vector.shape_cast %75 : vector<1x8x64xf32> to vector<8x64xf32>
    %77 = vector.shape_cast %73 : vector<8x64xf32> to vector<1x8x64xf32>
    tpu.vector_store %arg15[%74, %c0_35, %c0_36], %77 {strides = array<i32>} : memref<8x8x64xf32, #tpu.memory_space<vmem>>, vector<1x8x64xf32>,
    %c1_i32 = arith.constant 1 : i32
    %78 = arith.index_cast %c1_i32 : i32 to index
    %c0_37 = arith.constant 0 : index
    %c0_38 = arith.constant 0 : index
    %79 = vector.load %arg14[%78, %c0_37, %c0_38] : memref<8x8x256xf32, #tpu.memory_space<vmem>>, vector<1x8x256xf32>
    %80 = vector.shape_cast %79 : vector<1x8x256xf32> to vector<8x256xf32>
    %81 = arith.truncf %51 : vector<8x64xf32> to vector<8x64xbf16>
    %cst_39 = arith.constant dense<0.000000e+00> : vector<8x256xf32>
    %82 = tpu.matmul %81, %0, %cst_39 {dimension_numbers = #tpu.dot_dimension_numbers<[1], [0], [0], [1], [0, 0, 1, 1], [], []>} : vector<8x64xbf16>, vector<64x256xbf16>, vector<8x256xf32> -> vector<8x256xf32>
    %83 = arith.addf %80, %82 : vector<8x256xf32>
    %84 = math.tanh %83 : vector<8x256xf32>
    %85 = arith.negf %83 : vector<8x256xf32>
    %86 = math.exp %85 : vector<8x256xf32>
    %cst_40 = arith.constant 1.000000e+00 : f32
    %87 = vector.broadcast %cst_40 : f32 to vector<8x256xf32>
    %88 = arith.addf %87, %86 : vector<8x256xf32>
    %89 = arith.divf %87, %88 : vector<8x256xf32>
    %90 = arith.select %21, %84, %89 : vector<8x256xi1>, vector<8x256xf32>
    %91 = vector.extract_strided_slice %90 {offsets = [0, 0], sizes = [8, 64], strides = [1, 1]} : vector<8x256xf32> to vector<8x64xf32>
    %92 = vector.extract_strided_slice %90 {offsets = [0, 64], sizes = [8, 64], strides = [1, 1]} : vector<8x256xf32> to vector<8x64xf32>
    %93 = vector.extract_strided_slice %90 {offsets = [0, 128], sizes = [8, 64], strides = [1, 1]} : vector<8x256xf32> to vector<8x64xf32>
    %94 = vector.extract_strided_slice %90 {offsets = [0, 192], sizes = [8, 64], strides = [1, 1]} : vector<8x256xf32> to vector<8x64xf32>
    %95 = arith.mulf %92, %49 : vector<8x64xf32>
    %96 = arith.mulf %91, %93 : vector<8x64xf32>
    %97 = arith.addf %95, %96 : vector<8x64xf32>
    %98 = math.tanh %97 : vector<8x64xf32>
    %99 = arith.mulf %94, %98 : vector<8x64xf32>
    %100 = arith.truncf %99 : vector<8x64xf32> to vector<8x64xbf16>
    %cst_41 = arith.constant dense<0.000000e+00> : vector<8x256xf32>
    %101 = tpu.matmul %100, %1, %cst_41 {dimension_numbers = #tpu.dot_dimension_numbers<[1], [0], [0], [1], [0, 0, 1, 1], [], []>} : vector<8x64xbf16>, vector<64x256xbf16>, vector<8x256xf32> -> vector<8x256xf32>
    %102 = arith.truncf %73 : vector<8x64xf32> to vector<8x64xbf16>
    %cst_42 = arith.constant dense<0.000000e+00> : vector<8x256xf32>
    %103 = tpu.matmul %102, %2, %cst_42 {dimension_numbers = #tpu.dot_dimension_numbers<[1], [0], [0], [1], [0, 0, 1, 1], [], []>} : vector<8x64xbf16>, vector<64x256xbf16>, vector<8x256xf32> -> vector<8x256xf32>
    %104 = arith.addf %101, %103 : vector<8x256xf32>
    %105 = arith.addf %104, %5 : vector<8x256xf32>
    %106 = math.tanh %105 : vector<8x256xf32>
    %107 = arith.negf %105 : vector<8x256xf32>
    %108 = math.exp %107 : vector<8x256xf32>
    %cst_43 = arith.constant 1.000000e+00 : f32
    %109 = vector.broadcast %cst_43 : f32 to vector<8x256xf32>
    %110 = arith.addf %109, %108 : vector<8x256xf32>
    %111 = arith.divf %109, %110 : vector<8x256xf32>
    %112 = arith.select %21, %106, %111 : vector<8x256xi1>, vector<8x256xf32>
    %113 = vector.extract_strided_slice %112 {offsets = [0, 0], sizes = [8, 64], strides = [1, 1]} : vector<8x256xf32> to vector<8x64xf32>
    %114 = vector.extract_strided_slice %112 {offsets = [0, 64], sizes = [8, 64], strides = [1, 1]} : vector<8x256xf32> to vector<8x64xf32>
    %115 = vector.extract_strided_slice %112 {offsets = [0, 128], sizes = [8, 64], strides = [1, 1]} : vector<8x256xf32> to vector<8x64xf32>
    %116 = vector.extract_strided_slice %112 {offsets = [0, 192], sizes = [8, 64], strides = [1, 1]} : vector<8x256xf32> to vector<8x64xf32>
    %117 = arith.mulf %114, %71 : vector<8x64xf32>
    %118 = arith.mulf %113, %115 : vector<8x64xf32>
    %119 = arith.addf %117, %118 : vector<8x64xf32>
    %120 = math.tanh %119 : vector<8x64xf32>
    %121 = arith.mulf %116, %120 : vector<8x64xf32>
    %122 = arith.index_cast %c1_i32 : i32 to index
    %c0_44 = arith.constant 0 : index
    %c0_45 = arith.constant 0 : index
    %123 = vector.load %arg15[%122, %c0_44, %c0_45] : memref<8x8x64xf32, #tpu.memory_space<vmem>>, vector<1x8x64xf32>
    %124 = vector.shape_cast %123 : vector<1x8x64xf32> to vector<8x64xf32>
    %125 = vector.shape_cast %121 : vector<8x64xf32> to vector<1x8x64xf32>
    tpu.vector_store %arg15[%122, %c0_44, %c0_45], %125 {strides = array<i32>} : memref<8x8x64xf32, #tpu.memory_space<vmem>>, vector<1x8x64xf32>,
    %c2_i32 = arith.constant 2 : i32
    %126 = arith.index_cast %c2_i32 : i32 to index
    %c0_46 = arith.constant 0 : index
    %c0_47 = arith.constant 0 : index
    %127 = vector.load %arg14[%126, %c0_46, %c0_47] : memref<8x8x256xf32, #tpu.memory_space<vmem>>, vector<1x8x256xf32>
    %128 = vector.shape_cast %127 : vector<1x8x256xf32> to vector<8x256xf32>
    %129 = arith.truncf %99 : vector<8x64xf32> to vector<8x64xbf16>
    %cst_48 = arith.constant dense<0.000000e+00> : vector<8x256xf32>
    %130 = tpu.matmul %129, %0, %cst_48 {dimension_numbers = #tpu.dot_dimension_numbers<[1], [0], [0], [1], [0, 0, 1, 1], [], []>} : vector<8x64xbf16>, vector<64x256xbf16>, vector<8x256xf32> -> vector<8x256xf32>
    %131 = arith.addf %128, %130 : vector<8x256xf32>
    %132 = math.tanh %131 : vector<8x256xf32>
    %133 = arith.negf %131 : vector<8x256xf32>
    %134 = math.exp %133 : vector<8x256xf32>
    %cst_49 = arith.constant 1.000000e+00 : f32
    %135 = vector.broadcast %cst_49 : f32 to vector<8x256xf32>
    %136 = arith.addf %135, %134 : vector<8x256xf32>
    %137 = arith.divf %135, %136 : vector<8x256xf32>
    %138 = arith.select %21, %132, %137 : vector<8x256xi1>, vector<8x256xf32>
    %139 = vector.extract_strided_slice %138 {offsets = [0, 0], sizes = [8, 64], strides = [1, 1]} : vector<8x256xf32> to vector<8x64xf32>
    %140 = vector.extract_strided_slice %138 {offsets = [0, 64], sizes = [8, 64], strides = [1, 1]} : vector<8x256xf32> to vector<8x64xf32>
    %141 = vector.extract_strided_slice %138 {offsets = [0, 128], sizes = [8, 64], strides = [1, 1]} : vector<8x256xf32> to vector<8x64xf32>
    %142 = vector.extract_strided_slice %138 {offsets = [0, 192], sizes = [8, 64], strides = [1, 1]} : vector<8x256xf32> to vector<8x64xf32>
    %143 = arith.mulf %140, %97 : vector<8x64xf32>
    %144 = arith.mulf %139, %141 : vector<8x64xf32>
    %145 = arith.addf %143, %144 : vector<8x64xf32>
    %146 = math.tanh %145 : vector<8x64xf32>
    %147 = arith.mulf %142, %146 : vector<8x64xf32>
    %148 = arith.truncf %147 : vector<8x64xf32> to vector<8x64xbf16>
    %cst_50 = arith.constant dense<0.000000e+00> : vector<8x256xf32>
    %149 = tpu.matmul %148, %1, %cst_50 {dimension_numbers = #tpu.dot_dimension_numbers<[1], [0], [0], [1], [0, 0, 1, 1], [], []>} : vector<8x64xbf16>, vector<64x256xbf16>, vector<8x256xf32> -> vector<8x256xf32>
    %150 = arith.truncf %121 : vector<8x64xf32> to vector<8x64xbf16>
    %cst_51 = arith.constant dense<0.000000e+00> : vector<8x256xf32>
    %151 = tpu.matmul %150, %2, %cst_51 {dimension_numbers = #tpu.dot_dimension_numbers<[1], [0], [0], [1], [0, 0, 1, 1], [], []>} : vector<8x64xbf16>, vector<64x256xbf16>, vector<8x256xf32> -> vector<8x256xf32>
    %152 = arith.addf %149, %151 : vector<8x256xf32>
    %153 = arith.addf %152, %5 : vector<8x256xf32>
    %154 = math.tanh %153 : vector<8x256xf32>
    %155 = arith.negf %153 : vector<8x256xf32>
    %156 = math.exp %155 : vector<8x256xf32>
    %cst_52 = arith.constant 1.000000e+00 : f32
    %157 = vector.broadcast %cst_52 : f32 to vector<8x256xf32>
    %158 = arith.addf %157, %156 : vector<8x256xf32>
    %159 = arith.divf %157, %158 : vector<8x256xf32>
    %160 = arith.select %21, %154, %159 : vector<8x256xi1>, vector<8x256xf32>
    %161 = vector.extract_strided_slice %160 {offsets = [0, 0], sizes = [8, 64], strides = [1, 1]} : vector<8x256xf32> to vector<8x64xf32>
    %162 = vector.extract_strided_slice %160 {offsets = [0, 64], sizes = [8, 64], strides = [1, 1]} : vector<8x256xf32> to vector<8x64xf32>
    %163 = vector.extract_strided_slice %160 {offsets = [0, 128], sizes = [8, 64], strides = [1, 1]} : vector<8x256xf32> to vector<8x64xf32>
    %164 = vector.extract_strided_slice %160 {offsets = [0, 192], sizes = [8, 64], strides = [1, 1]} : vector<8x256xf32> to vector<8x64xf32>
    %165 = arith.mulf %162, %119 : vector<8x64xf32>
    %166 = arith.mulf %161, %163 : vector<8x64xf32>
    %167 = arith.addf %165, %166 : vector<8x64xf32>
    %168 = math.tanh %167 : vector<8x64xf32>
    %169 = arith.mulf %164, %168 : vector<8x64xf32>
    %170 = arith.index_cast %c2_i32 : i32 to index
    %c0_53 = arith.constant 0 : index
    %c0_54 = arith.constant 0 : index
    %171 = vector.load %arg15[%170, %c0_53, %c0_54] : memref<8x8x64xf32, #tpu.memory_space<vmem>>, vector<1x8x64xf32>
    %172 = vector.shape_cast %171 : vector<1x8x64xf32> to vector<8x64xf32>
    %173 = vector.shape_cast %169 : vector<8x64xf32> to vector<1x8x64xf32>
    tpu.vector_store %arg15[%170, %c0_53, %c0_54], %173 {strides = array<i32>} : memref<8x8x64xf32, #tpu.memory_space<vmem>>, vector<1x8x64xf32>,
    %c3_i32 = arith.constant 3 : i32
    %174 = arith.index_cast %c3_i32 : i32 to index
    %c0_55 = arith.constant 0 : index
    %c0_56 = arith.constant 0 : index
    %175 = vector.load %arg14[%174, %c0_55, %c0_56] : memref<8x8x256xf32, #tpu.memory_space<vmem>>, vector<1x8x256xf32>
    %176 = vector.shape_cast %175 : vector<1x8x256xf32> to vector<8x256xf32>
    %177 = arith.truncf %147 : vector<8x64xf32> to vector<8x64xbf16>
    %cst_57 = arith.constant dense<0.000000e+00> : vector<8x256xf32>
    %178 = tpu.matmul %177, %0, %cst_57 {dimension_numbers = #tpu.dot_dimension_numbers<[1], [0], [0], [1], [0, 0, 1, 1], [], []>} : vector<8x64xbf16>, vector<64x256xbf16>, vector<8x256xf32> -> vector<8x256xf32>
    %179 = arith.addf %176, %178 : vector<8x256xf32>
    %180 = math.tanh %179 : vector<8x256xf32>
    %181 = arith.negf %179 : vector<8x256xf32>
    %182 = math.exp %181 : vector<8x256xf32>
    %cst_58 = arith.constant 1.000000e+00 : f32
    %183 = vector.broadcast %cst_58 : f32 to vector<8x256xf32>
    %184 = arith.addf %183, %182 : vector<8x256xf32>
    %185 = arith.divf %183, %184 : vector<8x256xf32>
    %186 = arith.select %21, %180, %185 : vector<8x256xi1>, vector<8x256xf32>
    %187 = vector.extract_strided_slice %186 {offsets = [0, 0], sizes = [8, 64], strides = [1, 1]} : vector<8x256xf32> to vector<8x64xf32>
    %188 = vector.extract_strided_slice %186 {offsets = [0, 64], sizes = [8, 64], strides = [1, 1]} : vector<8x256xf32> to vector<8x64xf32>
    %189 = vector.extract_strided_slice %186 {offsets = [0, 128], sizes = [8, 64], strides = [1, 1]} : vector<8x256xf32> to vector<8x64xf32>
    %190 = vector.extract_strided_slice %186 {offsets = [0, 192], sizes = [8, 64], strides = [1, 1]} : vector<8x256xf32> to vector<8x64xf32>
    %191 = arith.mulf %188, %145 : vector<8x64xf32>
    %192 = arith.mulf %187, %189 : vector<8x64xf32>
    %193 = arith.addf %191, %192 : vector<8x64xf32>
    %194 = math.tanh %193 : vector<8x64xf32>
    %195 = arith.mulf %190, %194 : vector<8x64xf32>
    %196 = arith.truncf %195 : vector<8x64xf32> to vector<8x64xbf16>
    %cst_59 = arith.constant dense<0.000000e+00> : vector<8x256xf32>
    %197 = tpu.matmul %196, %1, %cst_59 {dimension_numbers = #tpu.dot_dimension_numbers<[1], [0], [0], [1], [0, 0, 1, 1], [], []>} : vector<8x64xbf16>, vector<64x256xbf16>, vector<8x256xf32> -> vector<8x256xf32>
    %198 = arith.truncf %169 : vector<8x64xf32> to vector<8x64xbf16>
    %cst_60 = arith.constant dense<0.000000e+00> : vector<8x256xf32>
    %199 = tpu.matmul %198, %2, %cst_60 {dimension_numbers = #tpu.dot_dimension_numbers<[1], [0], [0], [1], [0, 0, 1, 1], [], []>} : vector<8x64xbf16>, vector<64x256xbf16>, vector<8x256xf32> -> vector<8x256xf32>
    %200 = arith.addf %197, %199 : vector<8x256xf32>
    %201 = arith.addf %200, %5 : vector<8x256xf32>
    %202 = math.tanh %201 : vector<8x256xf32>
    %203 = arith.negf %201 : vector<8x256xf32>
    %204 = math.exp %203 : vector<8x256xf32>
    %cst_61 = arith.constant 1.000000e+00 : f32
    %205 = vector.broadcast %cst_61 : f32 to vector<8x256xf32>
    %206 = arith.addf %205, %204 : vector<8x256xf32>
    %207 = arith.divf %205, %206 : vector<8x256xf32>
    %208 = arith.select %21, %202, %207 : vector<8x256xi1>, vector<8x256xf32>
    %209 = vector.extract_strided_slice %208 {offsets = [0, 0], sizes = [8, 64], strides = [1, 1]} : vector<8x256xf32> to vector<8x64xf32>
    %210 = vector.extract_strided_slice %208 {offsets = [0, 64], sizes = [8, 64], strides = [1, 1]} : vector<8x256xf32> to vector<8x64xf32>
    %211 = vector.extract_strided_slice %208 {offsets = [0, 128], sizes = [8, 64], strides = [1, 1]} : vector<8x256xf32> to vector<8x64xf32>
    %212 = vector.extract_strided_slice %208 {offsets = [0, 192], sizes = [8, 64], strides = [1, 1]} : vector<8x256xf32> to vector<8x64xf32>
    %213 = arith.mulf %210, %167 : vector<8x64xf32>
    %214 = arith.mulf %209, %211 : vector<8x64xf32>
    %215 = arith.addf %213, %214 : vector<8x64xf32>
    %216 = math.tanh %215 : vector<8x64xf32>
    %217 = arith.mulf %212, %216 : vector<8x64xf32>
    %218 = arith.index_cast %c3_i32 : i32 to index
    %c0_62 = arith.constant 0 : index
    %c0_63 = arith.constant 0 : index
    %219 = vector.load %arg15[%218, %c0_62, %c0_63] : memref<8x8x64xf32, #tpu.memory_space<vmem>>, vector<1x8x64xf32>
    %220 = vector.shape_cast %219 : vector<1x8x64xf32> to vector<8x64xf32>
    %221 = vector.shape_cast %217 : vector<8x64xf32> to vector<1x8x64xf32>
    tpu.vector_store %arg15[%218, %c0_62, %c0_63], %221 {strides = array<i32>} : memref<8x8x64xf32, #tpu.memory_space<vmem>>, vector<1x8x64xf32>,
    %c4_i32 = arith.constant 4 : i32
    %222 = arith.index_cast %c4_i32 : i32 to index
    %c0_64 = arith.constant 0 : index
    %c0_65 = arith.constant 0 : index
    %223 = vector.load %arg14[%222, %c0_64, %c0_65] : memref<8x8x256xf32, #tpu.memory_space<vmem>>, vector<1x8x256xf32>
    %224 = vector.shape_cast %223 : vector<1x8x256xf32> to vector<8x256xf32>
    %225 = arith.truncf %195 : vector<8x64xf32> to vector<8x64xbf16>
    %cst_66 = arith.constant dense<0.000000e+00> : vector<8x256xf32>
    %226 = tpu.matmul %225, %0, %cst_66 {dimension_numbers = #tpu.dot_dimension_numbers<[1], [0], [0], [1], [0, 0, 1, 1], [], []>} : vector<8x64xbf16>, vector<64x256xbf16>, vector<8x256xf32> -> vector<8x256xf32>
    %227 = arith.addf %224, %226 : vector<8x256xf32>
    %228 = math.tanh %227 : vector<8x256xf32>
    %229 = arith.negf %227 : vector<8x256xf32>
    %230 = math.exp %229 : vector<8x256xf32>
    %cst_67 = arith.constant 1.000000e+00 : f32
    %231 = vector.broadcast %cst_67 : f32 to vector<8x256xf32>
    %232 = arith.addf %231, %230 : vector<8x256xf32>
    %233 = arith.divf %231, %232 : vector<8x256xf32>
    %234 = arith.select %21, %228, %233 : vector<8x256xi1>, vector<8x256xf32>
    %235 = vector.extract_strided_slice %234 {offsets = [0, 0], sizes = [8, 64], strides = [1, 1]} : vector<8x256xf32> to vector<8x64xf32>
    %236 = vector.extract_strided_slice %234 {offsets = [0, 64], sizes = [8, 64], strides = [1, 1]} : vector<8x256xf32> to vector<8x64xf32>
    %237 = vector.extract_strided_slice %234 {offsets = [0, 128], sizes = [8, 64], strides = [1, 1]} : vector<8x256xf32> to vector<8x64xf32>
    %238 = vector.extract_strided_slice %234 {offsets = [0, 192], sizes = [8, 64], strides = [1, 1]} : vector<8x256xf32> to vector<8x64xf32>
    %239 = arith.mulf %236, %193 : vector<8x64xf32>
    %240 = arith.mulf %235, %237 : vector<8x64xf32>
    %241 = arith.addf %239, %240 : vector<8x64xf32>
    %242 = math.tanh %241 : vector<8x64xf32>
    %243 = arith.mulf %238, %242 : vector<8x64xf32>
    %244 = arith.truncf %243 : vector<8x64xf32> to vector<8x64xbf16>
    %cst_68 = arith.constant dense<0.000000e+00> : vector<8x256xf32>
    %245 = tpu.matmul %244, %1, %cst_68 {dimension_numbers = #tpu.dot_dimension_numbers<[1], [0], [0], [1], [0, 0, 1, 1], [], []>} : vector<8x64xbf16>, vector<64x256xbf16>, vector<8x256xf32> -> vector<8x256xf32>
    %246 = arith.truncf %217 : vector<8x64xf32> to vector<8x64xbf16>
    %cst_69 = arith.constant dense<0.000000e+00> : vector<8x256xf32>
    %247 = tpu.matmul %246, %2, %cst_69 {dimension_numbers = #tpu.dot_dimension_numbers<[1], [0], [0], [1], [0, 0, 1, 1], [], []>} : vector<8x64xbf16>, vector<64x256xbf16>, vector<8x256xf32> -> vector<8x256xf32>
    %248 = arith.addf %245, %247 : vector<8x256xf32>
    %249 = arith.addf %248, %5 : vector<8x256xf32>
    %250 = math.tanh %249 : vector<8x256xf32>
    %251 = arith.negf %249 : vector<8x256xf32>
    %252 = math.exp %251 : vector<8x256xf32>
    %cst_70 = arith.constant 1.000000e+00 : f32
    %253 = vector.broadcast %cst_70 : f32 to vector<8x256xf32>
    %254 = arith.addf %253, %252 : vector<8x256xf32>
    %255 = arith.divf %253, %254 : vector<8x256xf32>
    %256 = arith.select %21, %250, %255 : vector<8x256xi1>, vector<8x256xf32>
    %257 = vector.extract_strided_slice %256 {offsets = [0, 0], sizes = [8, 64], strides = [1, 1]} : vector<8x256xf32> to vector<8x64xf32>
    %258 = vector.extract_strided_slice %256 {offsets = [0, 64], sizes = [8, 64], strides = [1, 1]} : vector<8x256xf32> to vector<8x64xf32>
    %259 = vector.extract_strided_slice %256 {offsets = [0, 128], sizes = [8, 64], strides = [1, 1]} : vector<8x256xf32> to vector<8x64xf32>
    %260 = vector.extract_strided_slice %256 {offsets = [0, 192], sizes = [8, 64], strides = [1, 1]} : vector<8x256xf32> to vector<8x64xf32>
    %261 = arith.mulf %258, %215 : vector<8x64xf32>
    %262 = arith.mulf %257, %259 : vector<8x64xf32>
    %263 = arith.addf %261, %262 : vector<8x64xf32>
    %264 = math.tanh %263 : vector<8x64xf32>
    %265 = arith.mulf %260, %264 : vector<8x64xf32>
    %266 = arith.index_cast %c4_i32 : i32 to index
    %c0_71 = arith.constant 0 : index
    %c0_72 = arith.constant 0 : index
    %267 = vector.load %arg15[%266, %c0_71, %c0_72] : memref<8x8x64xf32, #tpu.memory_space<vmem>>, vector<1x8x64xf32>
    %268 = vector.shape_cast %267 : vector<1x8x64xf32> to vector<8x64xf32>
    %269 = vector.shape_cast %265 : vector<8x64xf32> to vector<1x8x64xf32>
    tpu.vector_store %arg15[%266, %c0_71, %c0_72], %269 {strides = array<i32>} : memref<8x8x64xf32, #tpu.memory_space<vmem>>, vector<1x8x64xf32>,
    %c5_i32 = arith.constant 5 : i32
    %270 = arith.index_cast %c5_i32 : i32 to index
    %c0_73 = arith.constant 0 : index
    %c0_74 = arith.constant 0 : index
    %271 = vector.load %arg14[%270, %c0_73, %c0_74] : memref<8x8x256xf32, #tpu.memory_space<vmem>>, vector<1x8x256xf32>
    %272 = vector.shape_cast %271 : vector<1x8x256xf32> to vector<8x256xf32>
    %273 = arith.truncf %243 : vector<8x64xf32> to vector<8x64xbf16>
    %cst_75 = arith.constant dense<0.000000e+00> : vector<8x256xf32>
    %274 = tpu.matmul %273, %0, %cst_75 {dimension_numbers = #tpu.dot_dimension_numbers<[1], [0], [0], [1], [0, 0, 1, 1], [], []>} : vector<8x64xbf16>, vector<64x256xbf16>, vector<8x256xf32> -> vector<8x256xf32>
    %275 = arith.addf %272, %274 : vector<8x256xf32>
    %276 = math.tanh %275 : vector<8x256xf32>
    %277 = arith.negf %275 : vector<8x256xf32>
    %278 = math.exp %277 : vector<8x256xf32>
    %cst_76 = arith.constant 1.000000e+00 : f32
    %279 = vector.broadcast %cst_76 : f32 to vector<8x256xf32>
    %280 = arith.addf %279, %278 : vector<8x256xf32>
    %281 = arith.divf %279, %280 : vector<8x256xf32>
    %282 = arith.select %21, %276, %281 : vector<8x256xi1>, vector<8x256xf32>
    %283 = vector.extract_strided_slice %282 {offsets = [0, 0], sizes = [8, 64], strides = [1, 1]} : vector<8x256xf32> to vector<8x64xf32>
    %284 = vector.extract_strided_slice %282 {offsets = [0, 64], sizes = [8, 64], strides = [1, 1]} : vector<8x256xf32> to vector<8x64xf32>
    %285 = vector.extract_strided_slice %282 {offsets = [0, 128], sizes = [8, 64], strides = [1, 1]} : vector<8x256xf32> to vector<8x64xf32>
    %286 = vector.extract_strided_slice %282 {offsets = [0, 192], sizes = [8, 64], strides = [1, 1]} : vector<8x256xf32> to vector<8x64xf32>
    %287 = arith.mulf %284, %241 : vector<8x64xf32>
    %288 = arith.mulf %283, %285 : vector<8x64xf32>
    %289 = arith.addf %287, %288 : vector<8x64xf32>
    %290 = math.tanh %289 : vector<8x64xf32>
    %291 = arith.mulf %286, %290 : vector<8x64xf32>
    %292 = arith.truncf %291 : vector<8x64xf32> to vector<8x64xbf16>
    %cst_77 = arith.constant dense<0.000000e+00> : vector<8x256xf32>
    %293 = tpu.matmul %292, %1, %cst_77 {dimension_numbers = #tpu.dot_dimension_numbers<[1], [0], [0], [1], [0, 0, 1, 1], [], []>} : vector<8x64xbf16>, vector<64x256xbf16>, vector<8x256xf32> -> vector<8x256xf32>
    %294 = arith.truncf %265 : vector<8x64xf32> to vector<8x64xbf16>
    %cst_78 = arith.constant dense<0.000000e+00> : vector<8x256xf32>
    %295 = tpu.matmul %294, %2, %cst_78 {dimension_numbers = #tpu.dot_dimension_numbers<[1], [0], [0], [1], [0, 0, 1, 1], [], []>} : vector<8x64xbf16>, vector<64x256xbf16>, vector<8x256xf32> -> vector<8x256xf32>
    %296 = arith.addf %293, %295 : vector<8x256xf32>
    %297 = arith.addf %296, %5 : vector<8x256xf32>
    %298 = math.tanh %297 : vector<8x256xf32>
    %299 = arith.negf %297 : vector<8x256xf32>
    %300 = math.exp %299 : vector<8x256xf32>
    %cst_79 = arith.constant 1.000000e+00 : f32
    %301 = vector.broadcast %cst_79 : f32 to vector<8x256xf32>
    %302 = arith.addf %301, %300 : vector<8x256xf32>
    %303 = arith.divf %301, %302 : vector<8x256xf32>
    %304 = arith.select %21, %298, %303 : vector<8x256xi1>, vector<8x256xf32>
    %305 = vector.extract_strided_slice %304 {offsets = [0, 0], sizes = [8, 64], strides = [1, 1]} : vector<8x256xf32> to vector<8x64xf32>
    %306 = vector.extract_strided_slice %304 {offsets = [0, 64], sizes = [8, 64], strides = [1, 1]} : vector<8x256xf32> to vector<8x64xf32>
    %307 = vector.extract_strided_slice %304 {offsets = [0, 128], sizes = [8, 64], strides = [1, 1]} : vector<8x256xf32> to vector<8x64xf32>
    %308 = vector.extract_strided_slice %304 {offsets = [0, 192], sizes = [8, 64], strides = [1, 1]} : vector<8x256xf32> to vector<8x64xf32>
    %309 = arith.mulf %306, %263 : vector<8x64xf32>
    %310 = arith.mulf %305, %307 : vector<8x64xf32>
    %311 = arith.addf %309, %310 : vector<8x64xf32>
    %312 = math.tanh %311 : vector<8x64xf32>
    %313 = arith.mulf %308, %312 : vector<8x64xf32>
    %314 = arith.index_cast %c5_i32 : i32 to index
    %c0_80 = arith.constant 0 : index
    %c0_81 = arith.constant 0 : index
    %315 = vector.load %arg15[%314, %c0_80, %c0_81] : memref<8x8x64xf32, #tpu.memory_space<vmem>>, vector<1x8x64xf32>
    %316 = vector.shape_cast %315 : vector<1x8x64xf32> to vector<8x64xf32>
    %317 = vector.shape_cast %313 : vector<8x64xf32> to vector<1x8x64xf32>
    tpu.vector_store %arg15[%314, %c0_80, %c0_81], %317 {strides = array<i32>} : memref<8x8x64xf32, #tpu.memory_space<vmem>>, vector<1x8x64xf32>,
    %c6_i32 = arith.constant 6 : i32
    %318 = arith.index_cast %c6_i32 : i32 to index
    %c0_82 = arith.constant 0 : index
    %c0_83 = arith.constant 0 : index
    %319 = vector.load %arg14[%318, %c0_82, %c0_83] : memref<8x8x256xf32, #tpu.memory_space<vmem>>, vector<1x8x256xf32>
    %320 = vector.shape_cast %319 : vector<1x8x256xf32> to vector<8x256xf32>
    %321 = arith.truncf %291 : vector<8x64xf32> to vector<8x64xbf16>
    %cst_84 = arith.constant dense<0.000000e+00> : vector<8x256xf32>
    %322 = tpu.matmul %321, %0, %cst_84 {dimension_numbers = #tpu.dot_dimension_numbers<[1], [0], [0], [1], [0, 0, 1, 1], [], []>} : vector<8x64xbf16>, vector<64x256xbf16>, vector<8x256xf32> -> vector<8x256xf32>
    %323 = arith.addf %320, %322 : vector<8x256xf32>
    %324 = math.tanh %323 : vector<8x256xf32>
    %325 = arith.negf %323 : vector<8x256xf32>
    %326 = math.exp %325 : vector<8x256xf32>
    %cst_85 = arith.constant 1.000000e+00 : f32
    %327 = vector.broadcast %cst_85 : f32 to vector<8x256xf32>
    %328 = arith.addf %327, %326 : vector<8x256xf32>
    %329 = arith.divf %327, %328 : vector<8x256xf32>
    %330 = arith.select %21, %324, %329 : vector<8x256xi1>, vector<8x256xf32>
    %331 = vector.extract_strided_slice %330 {offsets = [0, 0], sizes = [8, 64], strides = [1, 1]} : vector<8x256xf32> to vector<8x64xf32>
    %332 = vector.extract_strided_slice %330 {offsets = [0, 64], sizes = [8, 64], strides = [1, 1]} : vector<8x256xf32> to vector<8x64xf32>
    %333 = vector.extract_strided_slice %330 {offsets = [0, 128], sizes = [8, 64], strides = [1, 1]} : vector<8x256xf32> to vector<8x64xf32>
    %334 = vector.extract_strided_slice %330 {offsets = [0, 192], sizes = [8, 64], strides = [1, 1]} : vector<8x256xf32> to vector<8x64xf32>
    %335 = arith.mulf %332, %289 : vector<8x64xf32>
    %336 = arith.mulf %331, %333 : vector<8x64xf32>
    %337 = arith.addf %335, %336 : vector<8x64xf32>
    %338 = math.tanh %337 : vector<8x64xf32>
    %339 = arith.mulf %334, %338 : vector<8x64xf32>
    %340 = arith.truncf %339 : vector<8x64xf32> to vector<8x64xbf16>
    %cst_86 = arith.constant dense<0.000000e+00> : vector<8x256xf32>
    %341 = tpu.matmul %340, %1, %cst_86 {dimension_numbers = #tpu.dot_dimension_numbers<[1], [0], [0], [1], [0, 0, 1, 1], [], []>} : vector<8x64xbf16>, vector<64x256xbf16>, vector<8x256xf32> -> vector<8x256xf32>
    %342 = arith.truncf %313 : vector<8x64xf32> to vector<8x64xbf16>
    %cst_87 = arith.constant dense<0.000000e+00> : vector<8x256xf32>
    %343 = tpu.matmul %342, %2, %cst_87 {dimension_numbers = #tpu.dot_dimension_numbers<[1], [0], [0], [1], [0, 0, 1, 1], [], []>} : vector<8x64xbf16>, vector<64x256xbf16>, vector<8x256xf32> -> vector<8x256xf32>
    %344 = arith.addf %341, %343 : vector<8x256xf32>
    %345 = arith.addf %344, %5 : vector<8x256xf32>
    %346 = math.tanh %345 : vector<8x256xf32>
    %347 = arith.negf %345 : vector<8x256xf32>
    %348 = math.exp %347 : vector<8x256xf32>
    %cst_88 = arith.constant 1.000000e+00 : f32
    %349 = vector.broadcast %cst_88 : f32 to vector<8x256xf32>
    %350 = arith.addf %349, %348 : vector<8x256xf32>
    %351 = arith.divf %349, %350 : vector<8x256xf32>
    %352 = arith.select %21, %346, %351 : vector<8x256xi1>, vector<8x256xf32>
    %353 = vector.extract_strided_slice %352 {offsets = [0, 0], sizes = [8, 64], strides = [1, 1]} : vector<8x256xf32> to vector<8x64xf32>
    %354 = vector.extract_strided_slice %352 {offsets = [0, 64], sizes = [8, 64], strides = [1, 1]} : vector<8x256xf32> to vector<8x64xf32>
    %355 = vector.extract_strided_slice %352 {offsets = [0, 128], sizes = [8, 64], strides = [1, 1]} : vector<8x256xf32> to vector<8x64xf32>
    %356 = vector.extract_strided_slice %352 {offsets = [0, 192], sizes = [8, 64], strides = [1, 1]} : vector<8x256xf32> to vector<8x64xf32>
    %357 = arith.mulf %354, %311 : vector<8x64xf32>
    %358 = arith.mulf %353, %355 : vector<8x64xf32>
    %359 = arith.addf %357, %358 : vector<8x64xf32>
    %360 = math.tanh %359 : vector<8x64xf32>
    %361 = arith.mulf %356, %360 : vector<8x64xf32>
    %362 = arith.index_cast %c6_i32 : i32 to index
    %c0_89 = arith.constant 0 : index
    %c0_90 = arith.constant 0 : index
    %363 = vector.load %arg15[%362, %c0_89, %c0_90] : memref<8x8x64xf32, #tpu.memory_space<vmem>>, vector<1x8x64xf32>
    %364 = vector.shape_cast %363 : vector<1x8x64xf32> to vector<8x64xf32>
    %365 = vector.shape_cast %361 : vector<8x64xf32> to vector<1x8x64xf32>
    tpu.vector_store %arg15[%362, %c0_89, %c0_90], %365 {strides = array<i32>} : memref<8x8x64xf32, #tpu.memory_space<vmem>>, vector<1x8x64xf32>,
    %c7_i32 = arith.constant 7 : i32
    %366 = arith.index_cast %c7_i32 : i32 to index
    %c0_91 = arith.constant 0 : index
    %c0_92 = arith.constant 0 : index
    %367 = vector.load %arg14[%366, %c0_91, %c0_92] : memref<8x8x256xf32, #tpu.memory_space<vmem>>, vector<1x8x256xf32>
    %368 = vector.shape_cast %367 : vector<1x8x256xf32> to vector<8x256xf32>
    %369 = arith.truncf %339 : vector<8x64xf32> to vector<8x64xbf16>
    %cst_93 = arith.constant dense<0.000000e+00> : vector<8x256xf32>
    %370 = tpu.matmul %369, %0, %cst_93 {dimension_numbers = #tpu.dot_dimension_numbers<[1], [0], [0], [1], [0, 0, 1, 1], [], []>} : vector<8x64xbf16>, vector<64x256xbf16>, vector<8x256xf32> -> vector<8x256xf32>
    %371 = arith.addf %368, %370 : vector<8x256xf32>
    %372 = math.tanh %371 : vector<8x256xf32>
    %373 = arith.negf %371 : vector<8x256xf32>
    %374 = math.exp %373 : vector<8x256xf32>
    %cst_94 = arith.constant 1.000000e+00 : f32
    %375 = vector.broadcast %cst_94 : f32 to vector<8x256xf32>
    %376 = arith.addf %375, %374 : vector<8x256xf32>
    %377 = arith.divf %375, %376 : vector<8x256xf32>
    %378 = arith.select %21, %372, %377 : vector<8x256xi1>, vector<8x256xf32>
    %379 = vector.extract_strided_slice %378 {offsets = [0, 0], sizes = [8, 64], strides = [1, 1]} : vector<8x256xf32> to vector<8x64xf32>
    %380 = vector.extract_strided_slice %378 {offsets = [0, 64], sizes = [8, 64], strides = [1, 1]} : vector<8x256xf32> to vector<8x64xf32>
    %381 = vector.extract_strided_slice %378 {offsets = [0, 128], sizes = [8, 64], strides = [1, 1]} : vector<8x256xf32> to vector<8x64xf32>
    %382 = vector.extract_strided_slice %378 {offsets = [0, 192], sizes = [8, 64], strides = [1, 1]} : vector<8x256xf32> to vector<8x64xf32>
    %383 = arith.mulf %380, %337 : vector<8x64xf32>
    %384 = arith.mulf %379, %381 : vector<8x64xf32>
    %385 = arith.addf %383, %384 : vector<8x64xf32>
    %386 = math.tanh %385 : vector<8x64xf32>
    %387 = arith.mulf %382, %386 : vector<8x64xf32>
    %388 = arith.truncf %387 : vector<8x64xf32> to vector<8x64xbf16>
    %cst_95 = arith.constant dense<0.000000e+00> : vector<8x256xf32>
    %389 = tpu.matmul %388, %1, %cst_95 {dimension_numbers = #tpu.dot_dimension_numbers<[1], [0], [0], [1], [0, 0, 1, 1], [], []>} : vector<8x64xbf16>, vector<64x256xbf16>, vector<8x256xf32> -> vector<8x256xf32>
    %390 = arith.truncf %361 : vector<8x64xf32> to vector<8x64xbf16>
    %cst_96 = arith.constant dense<0.000000e+00> : vector<8x256xf32>
    %391 = tpu.matmul %390, %2, %cst_96 {dimension_numbers = #tpu.dot_dimension_numbers<[1], [0], [0], [1], [0, 0, 1, 1], [], []>} : vector<8x64xbf16>, vector<64x256xbf16>, vector<8x256xf32> -> vector<8x256xf32>
    %392 = arith.addf %389, %391 : vector<8x256xf32>
    %393 = arith.addf %392, %5 : vector<8x256xf32>
    %394 = math.tanh %393 : vector<8x256xf32>
    %395 = arith.negf %393 : vector<8x256xf32>
    %396 = math.exp %395 : vector<8x256xf32>
    %cst_97 = arith.constant 1.000000e+00 : f32
    %397 = vector.broadcast %cst_97 : f32 to vector<8x256xf32>
    %398 = arith.addf %397, %396 : vector<8x256xf32>
    %399 = arith.divf %397, %398 : vector<8x256xf32>
    %400 = arith.select %21, %394, %399 : vector<8x256xi1>, vector<8x256xf32>
    %401 = vector.extract_strided_slice %400 {offsets = [0, 0], sizes = [8, 64], strides = [1, 1]} : vector<8x256xf32> to vector<8x64xf32>
    %402 = vector.extract_strided_slice %400 {offsets = [0, 64], sizes = [8, 64], strides = [1, 1]} : vector<8x256xf32> to vector<8x64xf32>
    %403 = vector.extract_strided_slice %400 {offsets = [0, 128], sizes = [8, 64], strides = [1, 1]} : vector<8x256xf32> to vector<8x64xf32>
    %404 = vector.extract_strided_slice %400 {offsets = [0, 192], sizes = [8, 64], strides = [1, 1]} : vector<8x256xf32> to vector<8x64xf32>
    %405 = arith.mulf %402, %359 : vector<8x64xf32>
    %406 = arith.mulf %401, %403 : vector<8x64xf32>
    %407 = arith.addf %405, %406 : vector<8x64xf32>
    %408 = math.tanh %407 : vector<8x64xf32>
    %409 = arith.mulf %404, %408 : vector<8x64xf32>
    %410 = arith.index_cast %c7_i32 : i32 to index
    %c0_98 = arith.constant 0 : index
    %c0_99 = arith.constant 0 : index
    %411 = vector.load %arg15[%410, %c0_98, %c0_99] : memref<8x8x64xf32, #tpu.memory_space<vmem>>, vector<1x8x64xf32>
    %412 = vector.shape_cast %411 : vector<1x8x64xf32> to vector<8x64xf32>
    %413 = vector.shape_cast %409 : vector<8x64xf32> to vector<1x8x64xf32>
    tpu.vector_store %arg15[%410, %c0_98, %c0_99], %413 {strides = array<i32>} : memref<8x8x64xf32, #tpu.memory_space<vmem>>, vector<1x8x64xf32>,
    %c8_i32 = arith.constant 8 : i32
    %c0_100 = arith.constant 0 : index
    %c0_101 = arith.constant 0 : index
    %c0_102 = arith.constant 0 : index
    %414 = vector.load %arg12[%c0_100, %c0_101, %c0_102] : memref<2x8x64xf32, #tpu.memory_space<vmem>>, vector<1x8x64xf32>
    %415 = vector.shape_cast %414 : vector<1x8x64xf32> to vector<8x64xf32>
    %416 = vector.shape_cast %387 : vector<8x64xf32> to vector<1x8x64xf32>
    tpu.vector_store %arg12[%c0_100, %c0_101, %c0_102], %416 {strides = array<i32>} : memref<2x8x64xf32, #tpu.memory_space<vmem>>, vector<1x8x64xf32>,
    %c1_103 = arith.constant 1 : index
    %c0_104 = arith.constant 0 : index
    %c0_105 = arith.constant 0 : index
    %417 = vector.load %arg12[%c1_103, %c0_104, %c0_105] : memref<2x8x64xf32, #tpu.memory_space<vmem>>, vector<1x8x64xf32>
    %418 = vector.shape_cast %417 : vector<1x8x64xf32> to vector<8x64xf32>
    %419 = vector.shape_cast %409 : vector<8x64xf32> to vector<1x8x64xf32>
    tpu.vector_store %arg12[%c1_103, %c0_104, %c0_105], %419 {strides = array<i32>} : memref<2x8x64xf32, #tpu.memory_space<vmem>>, vector<1x8x64xf32>,
    %c0_106 = arith.constant 0 : index
    %c0_107 = arith.constant 0 : index
    %c0_108 = arith.constant 0 : index
    %420 = vector.load %arg13[%c0_106, %c0_107, %c0_108] : memref<2x8x64xf32, #tpu.memory_space<vmem>>, vector<1x8x64xf32>
    %421 = vector.shape_cast %420 : vector<1x8x64xf32> to vector<8x64xf32>
    %422 = vector.shape_cast %385 : vector<8x64xf32> to vector<1x8x64xf32>
    tpu.vector_store %arg13[%c0_106, %c0_107, %c0_108], %422 {strides = array<i32>} : memref<2x8x64xf32, #tpu.memory_space<vmem>>, vector<1x8x64xf32>,
    %c1_109 = arith.constant 1 : index
    %c0_110 = arith.constant 0 : index
    %c0_111 = arith.constant 0 : index
    %423 = vector.load %arg13[%c1_109, %c0_110, %c0_111] : memref<2x8x64xf32, #tpu.memory_space<vmem>>, vector<1x8x64xf32>
    %424 = vector.shape_cast %423 : vector<1x8x64xf32> to vector<8x64xf32>
    %425 = vector.shape_cast %407 : vector<8x64xf32> to vector<1x8x64xf32>
    tpu.vector_store %arg13[%c1_109, %c0_110, %c0_111], %425 {strides = array<i32>} : memref<2x8x64xf32, #tpu.memory_space<vmem>>, vector<1x8x64xf32>,
    %c0_112 = arith.constant 0 : index
    %c0_113 = arith.constant 0 : index
    %c0_114 = arith.constant 0 : index
    %426 = vector.load %arg15[%c0_112, %c0_113, %c0_114] : memref<8x8x64xf32, #tpu.memory_space<vmem>>, vector<8x8x64xf32>
    %427 = vector.shape_cast %426 : vector<8x8x64xf32> to vector<64x64xf32>
    %428 = arith.truncf %427 : vector<64x64xf32> to vector<64x64xbf16>
    %c0_115 = arith.constant 0 : index
    %c0_116 = arith.constant 0 : index
    %429 = vector.load %arg9[%c0_115, %c0_116] : memref<64x4xbf16, #tpu.memory_space<vmem>>, vector<64x4xbf16>
    %cst_117 = arith.constant dense<0.000000e+00> : vector<64x4xf32>
    %430 = tpu.matmul %428, %429, %cst_117 {dimension_numbers = #tpu.dot_dimension_numbers<[1], [0], [0], [1], [0, 0, 1, 1], [], []>} : vector<64x64xbf16>, vector<64x4xbf16>, vector<64x4xf32> -> vector<64x4xf32>
    %c0_118 = arith.constant 0 : index
    %c0_119 = arith.constant 0 : index
    %431 = vector.load %arg10[%c0_118, %c0_119] : memref<1x4xf32, #tpu.memory_space<vmem>>, vector<1x4xf32>
    %432 = vector.broadcast %431 : vector<1x4xf32> to vector<64x4xf32>
    %433 = arith.addf %430, %432 : vector<64x4xf32>
    %434 = math.tanh %433 : vector<64x4xf32>
    %cst_120 = arith.constant 1.000000e+00 : f32
    %435 = vector.broadcast %cst_120 : f32 to vector<64x4xf32>
    %436 = arith.mulf %435, %434 : vector<64x4xf32>
    %437 = vector.shape_cast %436 : vector<64x4xf32> to vector<8x8x4xf32>
    %c0_121 = arith.constant 0 : index
    %c0_122 = arith.constant 0 : index
    %c0_123 = arith.constant 0 : index
    %438 = vector.load %arg11[%c0_121, %c0_122, %c0_123] : memref<8x8x4xf32, #tpu.memory_space<vmem>>, vector<8x8x4xf32>
    tpu.vector_store %arg11[%c0_121, %c0_122, %c0_123], %437 {strides = array<i32>} : memref<8x8x4xf32, #tpu.memory_space<vmem>>, vector<8x8x4xf32>,
    return
  }
}

</mosaic_0001>

<bundles_post_ra>
// kernel: tpu_custom_call.1
= control target key start
LH: loop header
LB: loop body
LE: loop exit
PB: predicated region body
PF: predicated region fallthrough
CT: control target
= control target key end

     0   :  { %19 = vsyncpa [#allocation5], 0  ;;  %s3712_s0 = inlined_call_operand.hbm [shape: f32[8,8,14], index: 0, kind: input, shape index: {}]   ;;  %s3713_s1 = inlined_call_operand.vmem [shape: f32[2,8,64], index: 1, kind: input, shape index: {}]   ;;  %s3714_s2 = inlined_call_operand.vmem [shape: f32[2,8,64], index: 2, kind: input, shape index: {}]   ;;  %s3715_s3 = inlined_call_operand.hbm [shape: bf16[14,256], index: 3, kind: input, shape index: {}]   ;;  %s3716_s4 = inlined_call_operand.hbm [shape: bf16[64,256], index: 4, kind: input, shape index: {}]   ;;  %s3717_s5 = inlined_call_operand.vmem [shape: f32[1,256], index: 5, kind: input, shape index: {}]   ;;  %s3718_s6 = inlined_call_operand.hbm [shape: bf16[64,256], index: 6, kind: input, shape index: {}]   ;;  %s3719_s7 = inlined_call_operand.hbm [shape: bf16[64,256], index: 7, kind: input, shape index: {}]   ;;  %s3720_s8 = inlined_call_operand.vmem [shape: f32[1,256], index: 8, kind: input, shape index: {}]   ;;  %s3721_s9 = inlined_call_operand.vmem [shape: bf16[64,4], index: 9, kind: input, shape index: {}]   ;;  %s3722_s10 = inlined_call_operand.vmem [shape: f32[1,4], index: 10, kind: input, shape index: {}]   ;;  %s3723_s11 = inlined_call_operand.vmem [shape: f32[8,8,4], index: 11, kind: output, shape index: {0}]   ;;  %s3724_s12 = inlined_call_operand.hbm [shape: f32[2,8,64], index: 12, kind: output, shape index: {1}]   ;;  %s3725_s13 = inlined_call_operand.hbm [shape: f32[2,8,64], index: 13, kind: output, shape index: {2}]  }
   0x1   :  { %20 = vsyncpa [#allocation8], 0 }
   0x2   :  { %21 = vsyncpa [#allocation11], 0 }
   0x3   :  { %22 = vsyncpa [#allocation6], 0 }
   0x4   :  { %23 = vsyncpa [#allocation15], 0  ;;  %s2810_s25 = smov [#allocation7]   ;;  %s2811_s27 = smov [#allocation10]  }
   0x5   :  { %s45_s26 = sshll.u32 %s2810_s25, 4  ;;  %s71_s28 = sshll.u32 %s2811_s27, 4  ;;  %s46_s26 = int_to_ptr.vmem [resolvable:$true] %s45_s26  ;;  %s2891_s28 = int_to_ptr.vmem [resolvable:$true] %s71_s28 }
   0x6   :  { %s2646_s14 = scalar_lea.hbm %s3715_s3, 256 }
   0x7   :  { %p2647_p0 = scmp.ne.s32.totalorder %s3715_s3, %s2646_s14  ;;  %p2650_p1 = scmp.lt.u32.totalorder %s2646_s14, %s3715_s3 }
   0x9   :  { %p2652_p2 = pnand %p2650_p1, %p2647_p0 }
   0xb   :  { %2655 = shalt.err (!%p2652_p2)
}
   0xc   :  { %s2656_s19 = scalar_lea.vmem %s46_s26, 256  ;;  %p2661_p4 = scmp.lt.s32.totalorder %s46_s26, %s46_s26 }
   0xd   :  { %p2657_p3 = scmp.ne.s32.totalorder %s46_s26, %s2656_s19  ;;  %p2662_p5 = scmp.lt.s32.totalorder %s2656_s19, %s2656_s19 }
   0xf   :  { %p2663_p6 = por %p2662_p5, %p2661_p4 }
  0x11   :  { %p2664_p7 = pnand %p2663_p6, %p2657_p3 }
  0x13   :  { %2667 = shalt.err (!%p2664_p7)
}
  0x14   :  { %s2812_s20 = smov 128   ;;  %s2813_s21 = smov 8  }
  0x15   :  { %51 = dma.hbm_to_vmem [thread:$0]  %s3715_s3, 256, %s46_s26, [#allocation8], %s2812_s20, %s2812_s20, %s2813_s21  }
  0x16   :  { %s2668_s27 = scalar_lea.hbm %s3718_s6, 1024 }
  0x17   :  { %p2669_p8 = scmp.ne.s32.totalorder %s3718_s6, %s2668_s27  ;;  %p2672_p9 = scmp.lt.u32.totalorder %s2668_s27, %s3718_s6 }
  0x19   :  { %p2674_p10 = pnand %p2672_p9, %p2669_p8 }
  0x1b   :  { %2677 = shalt.err (!%p2674_p10)
}
  0x1c   :  { %s2678_s16 = scalar_lea.vmem %s2891_s28, 1024  ;;  %p2683_p12 = scmp.lt.s32.totalorder %s2891_s28, %s2891_s28 }
  0x1d   :  { %p2679_p11 = scmp.ne.s32.totalorder %s2891_s28, %s2678_s16  ;;  %p2684_p13 = scmp.lt.s32.totalorder %s2678_s16, %s2678_s16 }
  0x1f   :  { %p2685_p0 = por %p2684_p13, %p2683_p12 }
  0x21   :  { %p2686_p1 = pnand %p2685_p0, %p2679_p11 }
  0x23   :  { %2689 = shalt.err (!%p2686_p1)
}
  0x24   :  { %77 = dma.hbm_to_vmem [thread:$0]  %s3718_s6, 1024, %s2891_s28, [#allocation11], %s2812_s20, %s2812_s20, %s2813_s21  }
  0x25   :  { %s2814_s17 = smov [#allocation4]   ;;  %s2815_s19 = smov [#allocation9]  }
  0x26   :  { %s29_s18 = sshll.u32 %s2814_s17, 4  ;;  %s57_s22 = sshll.u32 %s2815_s19, 4  ;;  %s30_s18 = int_to_ptr.vmem [resolvable:$true] %s29_s18  ;;  %s2928_s22 = int_to_ptr.vmem [resolvable:$true] %s57_s22 }
  0x27   :  { %s2690_s25 = scalar_lea.hbm %s3712_s0, 1024 }
  0x28   :  { %p2691_p2 = scmp.ne.s32.totalorder %s3712_s0, %s2690_s25  ;;  %p2694_p3 = scmp.lt.u32.totalorder %s2690_s25, %s3712_s0 }
  0x2a   :  { %p2696_p4 = pnand %p2694_p3, %p2691_p2 }
  0x2c   :  { %2699 = shalt.err (!%p2696_p4)
}
  0x2d   :  { %s2700_s6 = scalar_lea.vmem %s30_s18, 1024  ;;  %p2705_p6 = scmp.lt.s32.totalorder %s30_s18, %s30_s18 }
  0x2e   :  { %p2701_p5 = scmp.ne.s32.totalorder %s30_s18, %s2700_s6  ;;  %p2706_p7 = scmp.lt.s32.totalorder %s2700_s6, %s2700_s6 }
  0x30   :  { %p2707_p8 = por %p2706_p7, %p2705_p6 }
  0x32   :  { %p2708_p9 = pnand %p2707_p8, %p2701_p5 }
  0x34   :  { %2711 = shalt.err (!%p2708_p9)
}
  0x35   :  { %35 = dma.hbm_to_vmem [thread:$0]  %s3712_s0, 1024, %s30_s18, [#allocation5], %s2812_s20, %s2812_s20, %s2813_s21  }
  0x36   :  { %s2712_s26 = scalar_lea.hbm %s3716_s4, 1024 }
  0x37   :  { %p2713_p10 = scmp.ne.s32.totalorder %s3716_s4, %s2712_s26  ;;  %p2716_p11 = scmp.lt.u32.totalorder %s2712_s26, %s3716_s4 }
  0x39   :  { %p2718_p12 = pnand %p2716_p11, %p2713_p10 }
  0x3b   :  { %2721 = shalt.err (!%p2718_p12)
}
  0x3c   :  { %s2722_s25 = scalar_lea.vmem %s2928_s22, 1024  ;;  %p2727_p0 = scmp.lt.s32.totalorder %s2928_s22, %s2928_s22 }
  0x3d   :  { %p2723_p13 = scmp.ne.s32.totalorder %s2928_s22, %s2722_s25  ;;  %p2728_p1 = scmp.lt.s32.totalorder %s2722_s25, %s2722_s25 }
  0x3f   :  { %p2729_p2 = por %p2728_p1, %p2727_p0 }
  0x41   :  { %p2730_p3 = pnand %p2729_p2, %p2723_p13 }
  0x43   :  { %2733 = shalt.err (!%p2730_p3)
}
  0x44   :  { %63 = dma.hbm_to_vmem [thread:$0]  %s3716_s4, 1024, %s2928_s22, [#allocation8], %s2812_s20, %s2812_s20, %s2813_s21  }
  0x45   :  { %s2816_s27 = smov [#allocation12]   ;;  %s2734_s6 = scalar_lea.hbm %s3719_s7, 1024 }
  0x46   :  { %s83_s29 = sshll.u32 %s2816_s27, 4  ;;  %p2735_p4 = scmp.ne.s32.totalorder %s3719_s7, %s2734_s6  ;;  %s84_s29 = int_to_ptr.vmem [resolvable:$true] %s83_s29 }
  0x47   :  { %p2738_p5 = scmp.lt.u32.totalorder %s2734_s6, %s3719_s7 }
  0x49   :  { %p2740_p6 = pnand %p2738_p5, %p2735_p4 }
  0x4b   :  { %2743 = shalt.err (!%p2740_p6)
}
  0x4c   :  { %s2744_s26 = scalar_lea.vmem %s84_s29, 1024  ;;  %p2749_p8 = scmp.lt.s32.totalorder %s84_s29, %s84_s29 }
  0x4d   :  { %p2745_p7 = scmp.ne.s32.totalorder %s84_s29, %s2744_s26  ;;  %p2750_p9 = scmp.lt.s32.totalorder %s2744_s26, %s2744_s26 }
  0x4f   :  { %p2751_p10 = por %p2750_p9, %p2749_p8 }
  0x51   :  { %p2752_p11 = pnand %p2751_p10, %p2745_p7 }
  0x53   :  { %2755 = shalt.err (!%p2752_p11)
}
  0x54   :  { %89 = dma.hbm_to_vmem [thread:$0]  %s3719_s7, 1024, %s84_s29, [#allocation11], %s2812_s20, %s2812_s20, %s2813_s21  }
  0x55   :  { %2800 = dma.done.wait [#allocation5], 1024  }
  0x56   :  { %2801 = vsyncadd [#allocation5], 4294966272 }
  0x57   :  { %2802 = dma.done.wait [#allocation8], 1280  }
  0x58   :  { %2803 = vsyncadd [#allocation8], 4294966016 }
  0x59   :  { %2804 = dma.done.wait [#allocation11], 2048  }
  0x5a   :  { %2805 = vsyncadd [#allocation11], 4294965248  ;;  %v3726_v0 = vmov 0   ;;  %vm195_vm0 = vcmask 1046528   ;;  %v152_v3 = vld [vmem:[#allocation4 + $0x20] sm:$0xff]  ;;  %v153_v4 = vld [vmem:[#allocation4 + $0x28] sm:$0xff]  ;;  %v138_v24 = vlaneseq }
  0x5b   :  { %254 = vmatprep.mubr.bf16.mxu1 %v3726_v0  ;;  %234 = vmatprep.mubr.bf16.mxu0 %v3726_v0  ;;  %v2371_v1 = vld [vmem:[#allocation7 + $0x4] ss:$8 sps:$4 sm:$0x7f]   ;;  %v2373_v2 = vld [vmem:[#allocation7] ss:$8 sps:$4 sm:$0x7f]   ;;  %v158_v7 = vpack.c.bf16 %v153_v4, %v152_v3 }
  0x5c   :  { %2358 = vmatprep.subr.msk.bf16.mxu1 %vm195_vm0, %v2371_v1  ;;  %v2982_v5 = vld [vmem:[#allocation9 + $0x4] ss:$8 sps:$4 sm:$0xff]   ;;  %2238 = vmatprep.subr.msk.bf16.mxu0 %vm195_vm0, %v2371_v1  ;;  %v197_v6 = vsel %vm195_vm0, %v2373_v2, 0  ;;  %vm182_vm1 = vcmask 113664   ;;  %v2984_v8 = vld [vmem:[#allocation9] ss:$8 sps:$4 sm:$0xff]  }
  0x5d   :  { %2359 = vmatpush1.bf16.msra.mxu1 %v197_v6  ;;  %203 = vmatpush1.bf16.msra.mxu0 %v197_v6  ;;  %v2987_v9 = vld [vmem:[#allocation9 + $0x14] ss:$8 sps:$4 sm:$0xff]   ;;  %v2991_v12 = vld [vmem:[#allocation9 + $0x10] ss:$8 sps:$4 sm:$0xff]   ;;  %v154_v13 = vld [vmem:[#allocation4 + $0x30] sm:$0xff]  ;;  %s2818_s19 = smov 64  }
  0x5e   :  { %353 = vmatprep.subr.bf16.mxu1 %v2982_v5  ;;  %v148_v10 = vld [vmem:[#allocation4] sm:$0xff]  ;;  %v149_v11 = vld [vmem:[#allocation4 + $0x8] sm:$0xff]  ;;  %v155_v14 = vld [vmem:[#allocation4 + $0x38] sm:$0xff]  ;;  %vm349_vm2 = vcmask 523264   ;;  %v3027_v28 = vshrl.u32 %v138_v24, 7  ;;  %v292_v57 = vand.u32 127, %v138_v24 }
  0x5f   :  { %v156_v15 = vpack.c.bf16 %v149_v11, %v148_v10  ;;  %v2995_v16 = vld [vmem:[#allocation9 + $0x24] ss:$8 sps:$4 sm:$0xff]   ;;  %v301_v17 = vld [vmem:[%s3714_s2] sm:$0xff]  ;;  %v3000_v18 = vld [vmem:[#allocation9 + $0x20] ss:$8 sps:$4 sm:$0xff]   ;;  %v159_v19 = vpack.c.bf16 %v155_v14, %v154_v13  ;;  %s2819_s4 = smov [#allocation13]  }
  0x60   :  { %2241 = vmatmul.mubr.msk.bf16.vlgmr.msra.gmra.mrb[0].mxu1 %vm182_vm1, %v158_v7  ;;  %413 = vrot.lane.b32.xlu0 %v301_v17, %s2818_s19  ;;  %v3004_v20 = vld [vmem:[#allocation9 + $0x34] ss:$8 sps:$4 sm:$0xff]   ;;  %v3009_v21 = vld [vmem:[#allocation9 + $0x30] ss:$8 sps:$4 sm:$0xff]   ;;  %v140_v34 = vsub.s32 0, %v3027_v28  ;;  %v144_v36 = vsub.s32 1, %v3027_v28 }
  0x61   :  { %354 = vmatpush1.bf16.msra.mxu1 %v2984_v8  ;;  %264 = vmatprep.mubr.bf16.mxu1 %v3726_v0  ;;  %v300_v22 = vld [vmem:[%s3713_s1] sm:$0xff]  ;;  %v3058_v58 = vadd.s32 128, %v292_v57  ;;  %v3064_v1 = vld [vmem:[#allocation12 + $0x4] ss:$8 sps:$4 sm:$0xff]   ;;  %v3066_v2 = vld [vmem:[#allocation12] ss:$8 sps:$4 sm:$0xff]  }
  0x62   :  { %355 = vmatprep.subr.bf16.mxu1 %v2987_v9  ;;  %2239 = vmatmul.mubr.msk.bf16.vlgmr.msra.gmra.mrb[0].mxu0 %vm182_vm1, %v156_v15  ;;  %v308_v23 = vpack.c.bf16 %v300_v22, %v300_v22  ;;  %v162_v35 = vld [vmem:[%s3717_s5] sm:$0x3]  ;;  %v3068_v3 = vld [vmem:[#allocation12 + $0x14] ss:$8 sps:$4 sm:$0xff]   ;;  %v3071_v4 = vld [vmem:[#allocation10 + $0x4] ss:$8 sps:$4 sm:$0xff]  }
  0x63   :  { %244 = vmatprep.mubr.bf16.mxu0 %v3726_v0  ;;  %v3048_v40 = vrot.slane %v162_v35, %v140_v34  ;;  %v3054_v42 = vrot.slane %v162_v35, %v144_v36  ;;  %vm297_vm3 = vcmp.lt.s32.totalorder %v3058_v58, 192  ;;  %v3074_v6 = vld [vmem:[#allocation12 + $0x10] ss:$8 sps:$4 sm:$0xff]   ;;  %v3076_v7 = vld [vmem:[#allocation10] ss:$8 sps:$4 sm:$0xff]   ;;  %557 = vmatprep.subr.bf16.mxu0 %v3071_v4  ;;  %s2204_s22 = sshll.u32 %s2819_s4, 4  ;;  %s2205_s22 = int_to_ptr.vmem [resolvable:$true] %s2204_s22 }
  0x64   :  { %v3078_v10 = vld [vmem:[#allocation10 + $0x14] ss:$8 sps:$4 sm:$0xff]   ;;  %v3081_v11 = vld [vmem:[#allocation12 + $0x24] ss:$8 sps:$4 sm:$0xff]   ;;  %558 = vmatpush1.bf16.msra.mxu0 %v3076_v7  ;;  %v3085_v15 = vld [vmem:[#allocation10 + $0x10] ss:$8 sps:$4 sm:$0xff]   ;;  %p2761_p13 = scmp.lt.s32.totalorder %s2205_s22, %s2205_s22 }
  0x65   :  { %356 = vmatpush1.bf16.msra.mxu1 %v2991_v12  ;;  %v150_v13 = vld [vmem:[#allocation4 + $0x10] sm:$0xff]  ;;  %v151_v14 = vld [vmem:[#allocation4 + $0x18] sm:$0xff]  ;;  %559 = vmatprep.subr.bf16.mxu0 %v3078_v10  ;;  %v2243_v35 = vld [vmem:[%s3713_s1 + $0x8] sm:$0xff]  ;;  %vm2188_vm4 = vcmask 31744   ;;  %s2756_s17 = scalar_lea.vmem %s2205_s22, 256 }
  0x66   :  { %357 = vmatprep.subr.bf16.mxu1 %v2995_v16  ;;  %v157_v17 = vpack.c.bf16 %v151_v14, %v150_v13  ;;  %v3091_v22 = vld [vmem:[#allocation12 + $0x20] ss:$8 sps:$4 sm:$0xff]   ;;  %p2757_p12 = scmp.ne.s32.totalorder %s2205_s22, %s2756_s17  ;;  %p2762_p0 = scmp.lt.s32.totalorder %s2756_s17, %s2756_s17 }
  0x67   :  { %v3099_v24 = vld [vmem:[#allocation10 + $0x20] ss:$8 sps:$4 sm:$0xff]  }
  0x68   :  { %2242 = vmatmul.mubr.msk.bf16.gmra.mrb[4].mxu1 %vm182_vm1, %v159_v19  ;;  %v3088_v19 = vld [vmem:[#allocation10 + $0x24] ss:$8 sps:$4 sm:$0xff]   ;;  %560 = vmatpush1.bf16.msra.mxu0 %v3085_v15  ;;  %p2763_p1 = por %p2762_p0, %p2761_p13 }
  0x69   :  { %358 = vmatpush1.bf16.msra.mxu1 %v3000_v18  ;;  %385 = vmatprep.mubr.bf16.mxu1 %v3726_v0 }
  0x6a   :  { %359 = vmatprep.subr.bf16.mxu1 %v3004_v20  ;;  %2240 = vmatmul.mubr.msk.bf16.gmra.mrb[4].mxu0 %vm182_vm1, %v157_v17  ;;  %p2764_p2 = pnand %p2763_p1, %p2757_p12 }
  0x6b   :  { %589 = vmatprep.mubr.bf16.mxu0 %v3726_v0  ;;  %561 = vmatprep.subr.bf16.mxu0 %v3088_v19 }
  0x6c   :  { %562 = vmatpush1.bf16.msra.mxu0 %v3099_v24 }
  0x6d   :  { %360 = vmatpush1.bf16.msra.mxu1 %v3009_v21 }
  0x6e   :  { %470 = vmatprep.subr.bf16.mxu1 %v3064_v1 }
  0x70   :  { %2253 = vmatmul.mubr.msk.bf16.vlgmr.msra.gmra.mrb[8].mxu1 %vm349_vm2, %v308_v23  ;;  %v3095_v23 = vld [vmem:[#allocation12 + $0x34] ss:$8 sps:$4 sm:$0xff]  }
  0x71   :  { %502 = vmatprep.mubr.bf16.mxu1 %v3726_v0  ;;  %471 = vmatpush1.bf16.msra.mxu1 %v3066_v2 }
  0x72   :  { %472 = vmatprep.subr.bf16.mxu1 %v3068_v3 }
  0x75   :  { %473 = vmatpush1.bf16.msra.mxu1 %v3074_v6 }
  0x76   :  { %474 = vmatprep.subr.bf16.mxu1 %v3081_v11 }
  0x79   :  { %475 = vmatpush1.bf16.msra.mxu1 %v3091_v22 }
  0x7a   :  { %476 = vmatprep.subr.bf16.mxu1 %v3095_v23 }
 0x133   :  { %v3021_v25 = vpop.f32.mrb[0].mxu1 }
 0x134   :  { %v3023_v26 = vpop.f32.mrb[1].mxu1 }
 0x135   :  { %v3025_v27 = vpop.f32.mrb[2].mxu1  ;;  %v236_v30 = vpop.f32.mrb[0].mxu0 }
 0x136   :  { %v3029_v29 = vpop.f32.mrb[3].mxu1  ;;  %v238_v31 = vpop.f32.mrb[1].mxu0  ;;  %v237_v43 = vadd.f32 %v236_v30, %v3048_v40  ;;  %v3102_v30 = vld [vmem:[#allocation10 + $0x34] ss:$8 sps:$4 sm:$0xff]  }
 0x137   :  { %v3031_v32 = vpop.f32.mrb[2].mxu0  ;;  %v239_v44 = vadd.f32 %v238_v31, %v3054_v42  ;;  %v3105_v31 = vld [vmem:[#allocation12 + $0x30] ss:$8 sps:$4 sm:$0xff]   ;;  %563 = vmatprep.subr.bf16.mxu0 %v3102_v30 }
 0x138   :  { %v3033_v33 = vpop.f32.mrb[3].mxu0  ;;  %477 = vmatpush1.bf16.msra.mxu1 %v3105_v31  ;;  %v241_v13 = vadd.f32 %v3031_v32, %v3048_v40 }
 0x139   :  { %637 = vmatprep.subr.bf16.mxu1 %v2982_v5  ;;  %v243_v17 = vadd.f32 %v3033_v33, %v3054_v42 }
 0x13b   :  { %v3040_v37 = vpop.f32.mrb[4].mxu1 }
 0x13c   :  { %v3042_v38 = vpop.f32.mrb[5].mxu1 }
 0x13d   :  { %v3044_v39 = vpop.f32.mrb[6].mxu1 }
 0x13e   :  { %3728 = vst [vmem:[#allocation21_spill] sm:$0xff] %v3044_v39  ;;  %v3050_v41 = vpop.f32.mrb[7].mxu1 }
 0x13f   :  { %3729 = vst [vmem:[#allocation22_spill] sm:$0xff] %v3050_v41 }
 0x143   :  { %v387_v45 = vpop.f32.mrb[8].mxu1 }
 0x144   :  { %v394_v46 = vadd.f32 %v387_v45, %v237_v43  ;;  %v389_v47 = vpop.f32.mrb[9].mxu1  ;;  %v3112_v43 = vld [vmem:[#allocation10 + $0x30] ss:$8 sps:$4 sm:$0xff]   ;;  %v414_v45 = vpop.permute.xlu0 %413 }
 0x145   :  { %v395_v48 = vadd.f32 %v389_v47, %v239_v44  ;;  %v391_v49 = vpop.f32.mrb[10].mxu1  ;;  %v426_v44 = vpack.c.bf16 %v2243_v35, %v2243_v35  ;;  %564 = vmatpush1.bf16.msra.mxu0 %v3112_v43 }
 0x146   :  { %v2254_v50 = vmul.f32 -1.442695, %v394_v46  ;;  %v392_v51 = vpop.f32.mrb[11].mxu1  ;;  %713 = vmatprep.subr.bf16.mxu0 %v3064_v1 }
 0x147   :  { %v2255_v52 = vmul.f32 -1.442695, %v395_v48  ;;  %2264 = vmatmul.mubr.msk.bf16.vlgmr.msra.gmra.mrb[12].mxu1 %vm349_vm2, %v426_v44 }
 0x148   :  { %2414 = vpow2.f32 %v2254_v50  ;;  %638 = vmatpush1.bf16.msra.mxu1 %v2984_v8  ;;  %669 = vmatprep.mubr.bf16.mxu1 %v3726_v0 }
 0x149   :  { %2416 = vpow2.f32 %v2255_v52  ;;  %639 = vmatprep.subr.bf16.mxu1 %v2987_v9  ;;  %v2244_v52 = vld [vmem:[%s3714_s2 + $0x8] sm:$0xff] }
 0x14a   :  { %2418 = vtanh.f32 %v395_v48 }
 0x14c   :  { %640 = vmatpush1.bf16.msra.mxu1 %v2991_v12 }
 0x14d   :  { %641 = vmatprep.subr.bf16.mxu1 %v2995_v16 }
 0x150   :  { %642 = vmatpush1.bf16.msra.mxu1 %v3000_v18 }
 0x151   :  { %643 = vmatprep.subr.bf16.mxu1 %v3004_v20 }
 0x152   :  { %v2415_v53 = vpop.eup %2414 }
 0x153   :  { %v2417_v54 = vpop.eup %2416  ;;  %v404_v55 = vadd.f32 1.0, %v2415_v53  ;;  %v3137_v53 = vpop.f32.mrb[4].mxu0 }
 0x154   :  { %v405_v56 = vadd.f32 1.0, %v2417_v54  ;;  %v2419_v59 = vpop.eup %2418  ;;  %644 = vmatpush1.bf16.msra.mxu1 %v3009_v21  ;;  %v3139_v54 = vpop.f32.mrb[5].mxu0 }
 0x155   :  { %760 = vmatprep.subr.bf16.mxu1 %v3071_v4 }
 0x156   :  { %2420 = vrcp.f32 %v405_v56 }
 0x157   :  { %2422 = vrcp.f32 %v404_v55  ;;  %v3141_v55 = vpop.f32.mrb[6].mxu0 }
 0x158   :  { %v3143_v56 = vpop.f32.mrb[7].mxu0 }
 0x160   :  { %v2421_v60 = vpop.eup %2420 }
 0x161   :  { %v2423_v61 = vpop.eup %2422  ;;  %v411_v62 = vsel %vm297_vm3, %v2419_v59, %v2421_v60 }
 0x162   :  { %v417_v63 = vmul.f32 %v2423_v61, %v411_v62  ;;  %v416_v46 = vmul.f32 %v2423_v61, %v414_v45 }
 0x164   :  { %419 = vrot.lane.b32.xlu0 %v417_v63, %s2818_s19  ;;  %v136_v63 = vld [vmem:[%s3720_s8] sm:$0x3] }
 0x165   :  { %v3172_v14 = vrot.slane %v136_v63, %v140_v34  ;;  %v3178_v45 = vrot.slane %v136_v63, %v144_v36 }
 0x1d6   :  { %v420_v47 = vpop.permute.xlu0 %419 }
 0x1d7   :  { %v3129_v48 = vadd.f32 %v420_v47, %v416_v46 }
 0x1d9   :  { %2424 = vtanh.f32 %v3129_v48 }
 0x1e3   :  { %v2425_v49 = vpop.eup %2424 }
 0x1e4   :  { %v424_v50 = vmul.f32 %v2425_v49, %v411_v62 }
 0x1e6   :  { %v425_v51 = vpack.c.bf16 %v424_v50, %v424_v50 }
 0x1e8   :  { %512 = vrot.lane.b32.xlu1 %v425_v51, %s2818_s19 }
 0x1ec   :  { %617 = vrot.lane.b32.xlu1 %v2244_v52, %s2818_s19 }
 0x21a   :  { %v504_v57 = vpop.f32.mrb[12].mxu1 }
 0x21b   :  { %v506_v59 = vpop.f32.mrb[13].mxu1 }
 0x21c   :  { %v508_v60 = vpop.f32.mrb[14].mxu1 }
 0x21d   :  { %v509_v61 = vpop.f32.mrb[15].mxu1 }
 0x25a   :  { %v513_v62 = vpop.permute.xlu1 %512 }
 0x25b   :  { %2273 = vmatmul.mubr.msk.bf16.vlgmr.msra.gmra.mrb[8].mxu0 %vm349_vm2, %v513_v62  ;;  %2276 = vmatmul.mubr.msk.bf16.vlgmr.msra.gmra.mrb[16].mxu1 %vm349_vm2, %v513_v62 }
 0x25c   :  { %761 = vmatpush1.bf16.msra.mxu1 %v3076_v7  ;;  %714 = vmatpush1.bf16.msra.mxu0 %v3066_v2 }
 0x25d   :  { %762 = vmatprep.subr.bf16.mxu1 %v3078_v10  ;;  %715 = vmatprep.subr.bf16.mxu0 %v3068_v3 }
 0x25e   :  { %792 = vmatprep.mubr.bf16.mxu1 %v3726_v0  ;;  %745 = vmatprep.mubr.bf16.mxu0 %v3726_v0 }
 0x260   :  { %763 = vmatpush1.bf16.msra.mxu1 %v3085_v15  ;;  %716 = vmatpush1.bf16.msra.mxu0 %v3074_v6 }
 0x261   :  { %764 = vmatprep.subr.bf16.mxu1 %v3088_v19  ;;  %717 = vmatprep.subr.bf16.mxu0 %v3081_v11 }
 0x264   :  { %765 = vmatpush1.bf16.msra.mxu1 %v3099_v24  ;;  %718 = vmatpush1.bf16.msra.mxu0 %v3091_v22 }
 0x265   :  { %766 = vmatprep.subr.bf16.mxu1 %v3102_v30  ;;  %719 = vmatprep.subr.bf16.mxu0 %v3095_v23 }
 0x268   :  { %767 = vmatpush1.bf16.msra.mxu1 %v3112_v43  ;;  %720 = vmatpush1.bf16.msra.mxu0 %v3105_v31 }
 0x269   :  { %837 = vmatprep.subr.bf16.mxu0 %v2982_v5  ;;  %913 = vmatprep.subr.bf16.mxu1 %v3064_v1 }
 0x32e   :  { %v591_v35 = vpop.f32.mrb[8].mxu0  ;;  %v671_v44 = vpop.f32.mrb[16].mxu1 }
 0x32f   :  { %v592_v46 = vadd.f32 %v591_v35, %v504_v57  ;;  %v678_v47 = vadd.f32 %v671_v44, %v241_v13  ;;  %v593_v49 = vpop.f32.mrb[9].mxu0  ;;  %v673_v50 = vpop.f32.mrb[17].mxu1 }
 0x330   :  { %v594_v51 = vadd.f32 %v593_v49, %v506_v59  ;;  %v679_v52 = vadd.f32 %v673_v50, %v243_v17  ;;  %v595_v32 = vpop.f32.mrb[10].mxu0  ;;  %v675_v60 = vpop.f32.mrb[18].mxu1 }
 0x331   :  { %v598_v34 = vadd.f32 %v592_v46, %v3172_v14  ;;  %v2277_v61 = vmul.f32 -1.442695, %v678_v47  ;;  %v596_v62 = vpop.f32.mrb[11].mxu0  ;;  %v676_v0 = vpop.f32.mrb[19].mxu1 }
 0x332   :  { %v599_v33 = vadd.f32 %v594_v51, %v3178_v45  ;;  %v2278_v39 = vmul.f32 -1.442695, %v679_v52  ;;  %v618_v60 = vpop.permute.xlu1 %617 }
 0x333   :  { %v2274_v41 = vmul.f32 -1.442695, %v598_v34  ;;  %2426 = vpow2.f32 %v2277_v61 }
 0x334   :  { %v2275_v28 = vmul.f32 -1.442695, %v599_v33 }
 0x335   :  { %2428 = vpow2.f32 %v2274_v41 }
 0x336   :  { %2430 = vpow2.f32 %v2275_v28 }
 0x337   :  { %2432 = vpow2.f32 %v2278_v39 }
 0x338   :  { %2434 = vtanh.f32 %v679_v52 }
 0x339   :  { %2436 = vtanh.f32 %v599_v33 }
 0x33d   :  { %v2427_v36 = vpop.eup %2426 }
 0x33e   :  { %v688_v17 = vadd.f32 1.0, %v2427_v36 }
 0x33f   :  { %v2429_v57 = vpop.eup %2428 }
 0x340   :  { %v2431_v59 = vpop.eup %2430  ;;  %v608_v63 = vadd.f32 1.0, %v2429_v57 }
 0x341   :  { %v2433_v13 = vpop.eup %2432  ;;  %v609_v35 = vadd.f32 1.0, %v2431_v59 }
 0x342   :  { %2438 = vrcp.f32 %v608_v63  ;;  %v689_v0 = vadd.f32 1.0, %v2433_v13  ;;  %v2435_v44 = vpop.eup %2434 }
 0x343   :  { %2440 = vrcp.f32 %v609_v35  ;;  %v2437_v46 = vpop.eup %2436 }
 0x344   :  { %2442 = vrcp.f32 %v689_v0 }
 0x345   :  { %2444 = vrcp.f32 %v688_v17 }
 0x34c   :  { %v2439_v47 = vpop.eup %2438 }
 0x34d   :  { %v2441_v41 = vpop.eup %2440  ;;  %v620_v34 = vmul.f32 %v2439_v47, %v618_v60 }
 0x34e   :  { %v2443_v49 = vpop.eup %2442  ;;  %v615_v39 = vsel %vm297_vm3, %v2437_v46, %v2441_v41 }
 0x34f   :  { %v2445_v50 = vpop.eup %2444  ;;  %v695_v51 = vsel %vm297_vm3, %v2435_v44, %v2443_v49  ;;  %v621_v52 = vmul.f32 %v2439_v47, %v615_v39  ;;  %v3730_v44 = vmov 0  }
 0x350   :  { %v697_v32 = vmul.f32 %v2445_v50, %v695_v51  ;;  %v696_v61 = vmul.f32 %v2445_v50, %v3129_v48 }
 0x351   :  { %623 = vrot.lane.b32.xlu0 %v621_v52, %s2818_s19 }
 0x352   :  { %699 = vrot.lane.b32.xlu1 %v697_v32, %s2818_s19 }
 0x3c3   :  { %v624_v62 = vpop.permute.xlu0 %623 }
 0x3c4   :  { %v700_v33 = vpop.permute.xlu1 %699  ;;  %v3189_v28 = vadd.f32 %v624_v62, %v620_v34 }
 0x3c5   :  { %v3191_v36 = vadd.f32 %v700_v33, %v696_v61 }
 0x3c6   :  { %2446 = vtanh.f32 %v3189_v28 }
 0x3c7   :  { %2448 = vtanh.f32 %v3191_v36 }
 0x3d0   :  { %v2447_v57 = vpop.eup %2446 }
 0x3d1   :  { %v2449_v59 = vpop.eup %2448  ;;  %v3195_v63 = vmul.f32 %v2447_v57, %v615_v39  ;;  %v247_v57 = vadd.f32 %v3137_v53, %v3048_v40 }
 0x3d2   :  { %v704_v13 = vmul.f32 %v2449_v59, %v695_v51  ;;  %v249_v59 = vadd.f32 %v3139_v54, %v3054_v42 }
 0x3d3   :  { %v706_v17 = vpack.c.bf16 %v3195_v63, %v3195_v63 }
 0x3d4   :  { %v705_v35 = vpack.c.bf16 %v704_v13, %v704_v13 }
 0x3d5   :  { %708 = vrot.lane.b32.xlu0 %v706_v17, %s2818_s19 }
 0x3d6   :  { %755 = vrot.lane.b32.xlu1 %v705_v35, %s2818_s19 }
 0x447   :  { %v709_v48 = vpop.permute.xlu0 %708 }
 0x448   :  { %v756_v0 = vpop.permute.xlu1 %755  ;;  %2279 = vmatmul.mubr.msk.bf16.vlgmr.msra.gmra.mrb[12].mxu0 %vm349_vm2, %v709_v48 }
 0x449   :  { %2280 = vmatmul.mubr.msk.bf16.vlgmr.msra.gmra.mrb[20].mxu1 %vm349_vm2, %v756_v0  ;;  %838 = vmatpush1.bf16.msra.mxu0 %v2984_v8 }
 0x44a   :  { %839 = vmatprep.subr.bf16.mxu0 %v2987_v9  ;;  %869 = vmatprep.mubr.bf16.mxu0 %v3730_v44 }
 0x44b   :  { %914 = vmatpush1.bf16.msra.mxu1 %v3066_v2  ;;  %945 = vmatprep.mubr.bf16.mxu1 %v3730_v44 }
 0x44c   :  { %915 = vmatprep.subr.bf16.mxu1 %v3068_v3 }
 0x44d   :  { %840 = vmatpush1.bf16.msra.mxu0 %v2991_v12 }
 0x44e   :  { %841 = vmatprep.subr.bf16.mxu0 %v2995_v16 }
 0x44f   :  { %916 = vmatpush1.bf16.msra.mxu1 %v3074_v6 }
 0x450   :  { %917 = vmatprep.subr.bf16.mxu1 %v3081_v11 }
 0x451   :  { %842 = vmatpush1.bf16.msra.mxu0 %v3000_v18 }
 0x452   :  { %843 = vmatprep.subr.bf16.mxu0 %v3004_v20 }
 0x453   :  { %918 = vmatpush1.bf16.msra.mxu1 %v3091_v22 }
 0x454   :  { %919 = vmatprep.subr.bf16.mxu1 %v3095_v23 }
 0x455   :  { %844 = vmatpush1.bf16.msra.mxu0 %v3009_v21 }
 0x456   :  { %960 = vmatprep.subr.bf16.mxu0 %v3071_v4 }
 0x457   :  { %920 = vmatpush1.bf16.msra.mxu1 %v3105_v31 }
 0x458   :  { %2283 = vmatmul.mubr.msk.bf16.vlgmr.msra.gmra.mrb[16].mxu0 %vm349_vm2, %v756_v0  ;;  %1037 = vmatprep.subr.bf16.mxu1 %v2982_v5 }
 0x459   :  { %961 = vmatpush1.bf16.msra.mxu0 %v3076_v7  ;;  %992 = vmatprep.mubr.bf16.mxu0 %v3730_v44 }
 0x45a   :  { %962 = vmatprep.subr.bf16.mxu0 %v3078_v10 }
 0x45d   :  { %963 = vmatpush1.bf16.msra.mxu0 %v3085_v15 }
 0x45e   :  { %964 = vmatprep.subr.bf16.mxu0 %v3088_v19 }
 0x461   :  { %965 = vmatpush1.bf16.msra.mxu0 %v3099_v24 }
 0x462   :  { %966 = vmatprep.subr.bf16.mxu0 %v3102_v30 }
 0x465   :  { %967 = vmatpush1.bf16.msra.mxu0 %v3112_v43 }
 0x466   :  { %1113 = vmatprep.subr.bf16.mxu0 %v3064_v1 }
 0x51b   :  { %v747_v46 = vpop.f32.mrb[12].mxu0 }
 0x51c   :  { %v794_v47 = vpop.f32.mrb[20].mxu1  ;;  %v749_v41 = vpop.f32.mrb[13].mxu0 }
 0x51d   :  { %v796_v49 = vpop.f32.mrb[21].mxu1  ;;  %v795_v39 = vadd.f32 %v794_v47, %v747_v46  ;;  %v751_v50 = vpop.f32.mrb[14].mxu0 }
 0x51e   :  { %v798_v51 = vpop.f32.mrb[22].mxu1  ;;  %v797_v52 = vadd.f32 %v796_v49, %v749_v41  ;;  %v752_v32 = vpop.f32.mrb[15].mxu0 }
 0x51f   :  { %v801_v60 = vadd.f32 %v795_v39, %v3172_v14  ;;  %v799_v34 = vpop.f32.mrb[23].mxu1 }
 0x520   :  { %v802_v61 = vadd.f32 %v797_v52, %v3178_v45 }
 0x521   :  { %v2281_v62 = vmul.f32 -1.442695, %v801_v60 }
 0x522   :  { %v2282_v33 = vmul.f32 -1.442695, %v802_v61 }
 0x523   :  { %2450 = vpow2.f32 %v2281_v62 }
 0x524   :  { %2452 = vpow2.f32 %v2282_v33 }
 0x525   :  { %2454 = vtanh.f32 %v802_v61 }
 0x52b   :  { %v871_v13 = vpop.f32.mrb[16].mxu0 }
 0x52c   :  { %v878_v17 = vadd.f32 %v871_v13, %v247_v57  ;;  %v873_v35 = vpop.f32.mrb[17].mxu0 }
 0x52d   :  { %v2451_v48 = vpop.eup %2450  ;;  %v879_v0 = vadd.f32 %v873_v35, %v249_v59  ;;  %v875_v46 = vpop.f32.mrb[18].mxu0 }
 0x52e   :  { %v2453_v47 = vpop.eup %2452  ;;  %v811_v41 = vadd.f32 1.0, %v2451_v48  ;;  %v2284_v49 = vmul.f32 -1.442695, %v878_v17  ;;  %v876_v39 = vpop.f32.mrb[19].mxu0 }
 0x52f   :  { %v812_v50 = vadd.f32 1.0, %v2453_v47  ;;  %v2285_v51 = vmul.f32 -1.442695, %v879_v0  ;;  %v2455_v53 = vpop.eup %2454 }
 0x530   :  { %2456 = vrcp.f32 %v811_v41 }
 0x531   :  { %2458 = vrcp.f32 %v812_v50 }
 0x532   :  { %2460 = vpow2.f32 %v2284_v49 }
 0x533   :  { %2462 = vpow2.f32 %v2285_v51 }
 0x534   :  { %2464 = vtanh.f32 %v879_v0 }
 0x53a   :  { %v2457_v52 = vpop.eup %2456 }
 0x53b   :  { %v2459_v54 = vpop.eup %2458  ;;  %v819_v48 = vmul.f32 %v2457_v52, %v3189_v28 }
 0x53c   :  { %v2461_v32 = vpop.eup %2460  ;;  %v818_v60 = vsel %vm297_vm3, %v2455_v53, %v2459_v54 }
 0x53d   :  { %v2463_v34 = vpop.eup %2462  ;;  %v888_v62 = vadd.f32 1.0, %v2461_v32  ;;  %v820_v33 = vmul.f32 %v2457_v52, %v818_v60 }
 0x53e   :  { %v889_v57 = vadd.f32 1.0, %v2463_v34  ;;  %v2465_v61 = vpop.eup %2464 }
 0x53f   :  { %822 = vrot.lane.b32.xlu0 %v820_v33, %s2818_s19  ;;  %v251_v33 = vadd.f32 %v3141_v55, %v3048_v40 }
 0x540   :  { %2466 = vrcp.f32 %v889_v57 }
 0x541   :  { %2468 = vrcp.f32 %v888_v62 }
 0x54a   :  { %v2467_v59 = vpop.eup %2466 }
 0x54b   :  { %v2469_v13 = vpop.eup %2468  ;;  %v895_v17 = vsel %vm297_vm3, %v2465_v61, %v2467_v59  ;;  %v253_v61 = vadd.f32 %v3143_v56, %v3054_v42 }
 0x54c   :  { %v897_v35 = vmul.f32 %v2469_v13, %v895_v17  ;;  %v896_v41 = vmul.f32 %v2469_v13, %v3191_v36 }
 0x54e   :  { %899 = vrot.lane.b32.xlu1 %v897_v35, %s2818_s19 }
 0x5b1   :  { %v823_v46 = vpop.permute.xlu0 %822 }
 0x5b2   :  { %v3244_v47 = vadd.f32 %v823_v46, %v819_v48 }
 0x5b4   :  { %2470 = vtanh.f32 %v3244_v47 }
 0x5be   :  { %v2471_v0 = vpop.eup %2470 }
 0x5bf   :  { %v3248_v49 = vmul.f32 %v2471_v0, %v818_v60 }
 0x5c0   :  { %v900_v39 = vpop.permute.xlu1 %899 }
 0x5c1   :  { %v3250_v50 = vadd.f32 %v900_v39, %v896_v41  ;;  %v906_v51 = vpack.c.bf16 %v3248_v49, %v3248_v49 }
 0x5c3   :  { %2472 = vtanh.f32 %v3250_v50  ;;  %908 = vrot.lane.b32.xlu0 %v906_v51, %s2818_s19 }
 0x5cd   :  { %v2473_v28 = vpop.eup %2472 }
 0x5ce   :  { %v904_v53 = vmul.f32 %v2473_v28, %v895_v17 }
 0x5d0   :  { %v905_v52 = vpack.c.bf16 %v904_v53, %v904_v53 }
 0x5d2   :  { %955 = vrot.lane.b32.xlu1 %v905_v52, %s2818_s19 }
 0x635   :  { %v909_v54 = vpop.permute.xlu0 %908 }
 0x636   :  { %2286 = vmatmul.mubr.msk.bf16.vlgmr.msra.gmra.mrb[24].mxu1 %vm349_vm2, %v909_v54 }
 0x637   :  { %1038 = vmatpush1.bf16.msra.mxu1 %v2984_v8  ;;  %1069 = vmatprep.mubr.bf16.mxu1 %v3730_v44 }
 0x638   :  { %1039 = vmatprep.subr.bf16.mxu1 %v2987_v9 }
 0x63b   :  { %1040 = vmatpush1.bf16.msra.mxu1 %v2991_v12 }
 0x63c   :  { %1041 = vmatprep.subr.bf16.mxu1 %v2995_v16 }
 0x63f   :  { %1042 = vmatpush1.bf16.msra.mxu1 %v3000_v18 }
 0x640   :  { %1043 = vmatprep.subr.bf16.mxu1 %v3004_v20 }
 0x643   :  { %1044 = vmatpush1.bf16.msra.mxu1 %v3009_v21 }
 0x644   :  { %v956_v36 = vpop.permute.xlu1 %955  ;;  %1160 = vmatprep.subr.bf16.mxu1 %v3071_v4 }
 0x645   :  { %2287 = vmatmul.mubr.msk.bf16.vlgmr.msra.gmra.mrb[20].mxu0 %vm349_vm2, %v956_v36 }
 0x646   :  { %2290 = vmatmul.mubr.msk.bf16.vlgmr.msra.gmra.mrb[28].mxu1 %vm349_vm2, %v956_v36  ;;  %1114 = vmatpush1.bf16.msra.mxu0 %v3066_v2 }
 0x647   :  { %1161 = vmatpush1.bf16.msra.mxu1 %v3076_v7  ;;  %1115 = vmatprep.subr.bf16.mxu0 %v3068_v3 }
 0x648   :  { %1162 = vmatprep.subr.bf16.mxu1 %v3078_v10  ;;  %1145 = vmatprep.mubr.bf16.mxu0 %v3730_v44 }
 0x649   :  { %1192 = vmatprep.mubr.bf16.mxu1 %v3730_v44 }
 0x64a   :  { %1116 = vmatpush1.bf16.msra.mxu0 %v3074_v6 }
 0x64b   :  { %1163 = vmatpush1.bf16.msra.mxu1 %v3085_v15  ;;  %1117 = vmatprep.subr.bf16.mxu0 %v3081_v11 }
 0x64c   :  { %1164 = vmatprep.subr.bf16.mxu1 %v3088_v19 }
 0x64e   :  { %1118 = vmatpush1.bf16.msra.mxu0 %v3091_v22 }
 0x64f   :  { %1165 = vmatpush1.bf16.msra.mxu1 %v3099_v24  ;;  %1119 = vmatprep.subr.bf16.mxu0 %v3095_v23 }
 0x650   :  { %1166 = vmatprep.subr.bf16.mxu1 %v3102_v30 }
 0x652   :  { %1120 = vmatpush1.bf16.msra.mxu0 %v3105_v31 }
 0x653   :  { %1167 = vmatpush1.bf16.msra.mxu1 %v3112_v43  ;;  %1237 = vmatprep.subr.bf16.mxu0 %v2982_v5 }
 0x654   :  { %1313 = vmatprep.subr.bf16.mxu1 %v3064_v1 }
 0x709   :  { %v947_v32 = vpop.f32.mrb[24].mxu1 }
 0x70a   :  { %v949_v60 = vpop.f32.mrb[25].mxu1 }
 0x70b   :  { %v951_v34 = vpop.f32.mrb[26].mxu1 }
 0x70c   :  { %v952_v62 = vpop.f32.mrb[27].mxu1 }
 0x718   :  { %v994_v57 = vpop.f32.mrb[20].mxu0 }
 0x719   :  { %v995_v59 = vadd.f32 %v994_v57, %v947_v32  ;;  %v996_v13 = vpop.f32.mrb[21].mxu0  ;;  %v1071_v17 = vpop.f32.mrb[28].mxu1 }
 0x71a   :  { %v997_v35 = vadd.f32 %v996_v13, %v949_v60  ;;  %v998_v48 = vpop.f32.mrb[22].mxu0  ;;  %v1078_v46 = vadd.f32 %v1071_v17, %v251_v33  ;;  %v1073_v0 = vpop.f32.mrb[29].mxu1 }
 0x71b   :  { %v1001_v41 = vadd.f32 %v995_v59, %v3172_v14  ;;  %v999_v39 = vpop.f32.mrb[23].mxu0  ;;  %v1079_v51 = vadd.f32 %v1073_v0, %v253_v61  ;;  %v1075_v28 = vpop.f32.mrb[30].mxu1 }
 0x71c   :  { %v1002_v53 = vadd.f32 %v997_v35, %v3178_v45  ;;  %v1076_v52 = vpop.f32.mrb[31].mxu1  ;;  %v2291_v54 = vmul.f32 -1.442695, %v1078_v46 }
 0x71d   :  { %v2288_v55 = vmul.f32 -1.442695, %v1001_v41  ;;  %v2292_v34 = vmul.f32 -1.442695, %v1079_v51 }
 0x71e   :  { %v2289_v36 = vmul.f32 -1.442695, %v1002_v53 }
 0x71f   :  { %2474 = vpow2.f32 %v2288_v55 }
 0x720   :  { %2476 = vpow2.f32 %v2289_v36 }
 0x721   :  { %2478 = vpow2.f32 %v2291_v54 }
 0x722   :  { %2480 = vpow2.f32 %v2292_v34 }
 0x723   :  { %2482 = vtanh.f32 %v1079_v51 }
 0x724   :  { %2484 = vtanh.f32 %v1002_v53 }
 0x729   :  { %v2475_v56 = vpop.eup %2474 }
 0x72a   :  { %v2477_v32 = vpop.eup %2476  ;;  %v1011_v60 = vadd.f32 1.0, %v2475_v56 }
 0x72b   :  { %v2479_v62 = vpop.eup %2478  ;;  %v1012_v33 = vadd.f32 1.0, %v2477_v32 }
 0x72c   :  { %v2481_v57 = vpop.eup %2480  ;;  %v1088_v61 = vadd.f32 1.0, %v2479_v62 }
 0x72d   :  { %2486 = vrcp.f32 %v1012_v33  ;;  %v1089_v59 = vadd.f32 1.0, %v2481_v57  ;;  %v2483_v13 = vpop.eup %2482 }
 0x72e   :  { %2488 = vrcp.f32 %v1011_v60  ;;  %v2485_v17 = vpop.eup %2484 }
 0x72f   :  { %2490 = vrcp.f32 %v1089_v59 }
 0x730   :  { %2492 = vrcp.f32 %v1088_v61 }
 0x737   :  { %v2487_v35 = vpop.eup %2486 }
 0x738   :  { %v2489_v48 = vpop.eup %2488  ;;  %v1018_v46 = vsel %vm297_vm3, %v2485_v17, %v2487_v35 }
 0x739   :  { %v2491_v0 = vpop.eup %2490  ;;  %v1020_v41 = vmul.f32 %v2489_v48, %v1018_v46  ;;  %v1019_v53 = vmul.f32 %v2489_v48, %v3244_v47 }
 0x73a   :  { %v2493_v39 = vpop.eup %2492  ;;  %v1095_v51 = vsel %vm297_vm3, %v2483_v13, %v2491_v0  ;;  %v259_v0 = vadd.f32 %v3023_v26, %v3054_v42 }
 0x73b   :  { %1022 = vrot.lane.b32.xlu0 %v1020_v41, %s2818_s19  ;;  %v1097_v28 = vmul.f32 %v2493_v39, %v1095_v51  ;;  %v1096_v54 = vmul.f32 %v2493_v39, %v3250_v50 }
 0x73d   :  { %1099 = vrot.lane.b32.xlu1 %v1097_v28, %s2818_s19 }
 0x7ad   :  { %v1023_v52 = vpop.permute.xlu0 %1022 }
 0x7ae   :  { %v3300_v55 = vadd.f32 %v1023_v52, %v1019_v53 }
 0x7af   :  { %v1100_v36 = vpop.permute.xlu1 %1099 }
 0x7b0   :  { %2494 = vtanh.f32 %v3300_v55  ;;  %v3304_v34 = vadd.f32 %v1100_v36, %v1096_v54 }
 0x7b2   :  { %2496 = vtanh.f32 %v3304_v34 }
 0x7ba   :  { %v2495_v56 = vpop.eup %2494 }
 0x7bb   :  { %v3307_v32 = vmul.f32 %v2495_v56, %v1018_v46  ;;  %v257_v46 = vadd.f32 %v3021_v25, %v3048_v40 }
 0x7bc   :  { %v2497_v60 = vpop.eup %2496 }
 0x7bd   :  { %v1106_v62 = vpack.c.bf16 %v3307_v32, %v3307_v32  ;;  %v1104_v47 = vmul.f32 %v2497_v60, %v1095_v51 }
 0x7bf   :  { %1108 = vrot.lane.b32.xlu0 %v1106_v62, %s2818_s19  ;;  %v1105_v33 = vpack.c.bf16 %v1104_v47, %v1104_v47 }
 0x7c1   :  { %1155 = vrot.lane.b32.xlu1 %v1105_v33, %s2818_s19 }
 0x831   :  { %v1109_v50 = vpop.permute.xlu0 %1108 }
 0x832   :  { %2293 = vmatmul.mubr.msk.bf16.vlgmr.msra.gmra.mrb[24].mxu0 %vm349_vm2, %v1109_v50 }
 0x833   :  { %v1156_v57 = vpop.permute.xlu1 %1155  ;;  %1238 = vmatpush1.bf16.msra.mxu0 %v2984_v8  ;;  %1269 = vmatprep.mubr.bf16.mxu0 %v3730_v44 }
 0x834   :  { %2294 = vmatmul.mubr.msk.bf16.vlgmr.msra.gmra.mrb[32].mxu1 %vm349_vm2, %v1156_v57  ;;  %1239 = vmatprep.subr.bf16.mxu0 %v2987_v9 }
 0x835   :  { %1314 = vmatpush1.bf16.msra.mxu1 %v3066_v2  ;;  %1345 = vmatprep.mubr.bf16.mxu1 %v3730_v44 }
 0x836   :  { %1315 = vmatprep.subr.bf16.mxu1 %v3068_v3 }
 0x837   :  { %1240 = vmatpush1.bf16.msra.mxu0 %v2991_v12 }
 0x838   :  { %1241 = vmatprep.subr.bf16.mxu0 %v2995_v16 }
 0x839   :  { %1316 = vmatpush1.bf16.msra.mxu1 %v3074_v6 }
 0x83a   :  { %1317 = vmatprep.subr.bf16.mxu1 %v3081_v11 }
 0x83b   :  { %1242 = vmatpush1.bf16.msra.mxu0 %v3000_v18 }
 0x83c   :  { %1243 = vmatprep.subr.bf16.mxu0 %v3004_v20 }
 0x83d   :  { %1318 = vmatpush1.bf16.msra.mxu1 %v3091_v22 }
 0x83e   :  { %1319 = vmatprep.subr.bf16.mxu1 %v3095_v23 }
 0x83f   :  { %1244 = vmatpush1.bf16.msra.mxu0 %v3009_v21 }
 0x840   :  { %1360 = vmatprep.subr.bf16.mxu0 %v3071_v4 }
 0x841   :  { %1320 = vmatpush1.bf16.msra.mxu1 %v3105_v31 }
 0x842   :  { %2297 = vmatmul.mubr.msk.bf16.vlgmr.msra.gmra.mrb[28].mxu0 %vm349_vm2, %v1156_v57  ;;  %1437 = vmatprep.subr.bf16.mxu1 %v2982_v5 }
 0x843   :  { %1361 = vmatpush1.bf16.msra.mxu0 %v3076_v7  ;;  %1392 = vmatprep.mubr.bf16.mxu0 %v3730_v44 }
 0x844   :  { %1362 = vmatprep.subr.bf16.mxu0 %v3078_v10 }
 0x847   :  { %1363 = vmatpush1.bf16.msra.mxu0 %v3085_v15 }
 0x848   :  { %1364 = vmatprep.subr.bf16.mxu0 %v3088_v19 }
 0x84b   :  { %1365 = vmatpush1.bf16.msra.mxu0 %v3099_v24 }
 0x84c   :  { %1366 = vmatprep.subr.bf16.mxu0 %v3102_v30 }
 0x84f   :  { %1367 = vmatpush1.bf16.msra.mxu0 %v3112_v43 }
 0x850   :  { %1513 = vmatprep.subr.bf16.mxu0 %v3064_v1 }
 0x905   :  { %v1147_v8 = vpop.f32.mrb[24].mxu0 }
 0x906   :  { %v1149_v5 = vpop.f32.mrb[25].mxu0 }
 0x907   :  { %v1194_v9 = vpop.f32.mrb[32].mxu1  ;;  %v1151_v12 = vpop.f32.mrb[26].mxu0 }
 0x908   :  { %v1195_v16 = vadd.f32 %v1194_v9, %v1147_v8  ;;  %v1196_v18 = vpop.f32.mrb[33].mxu1  ;;  %v1152_v20 = vpop.f32.mrb[27].mxu0 }
 0x909   :  { %v1197_v21 = vadd.f32 %v1196_v18, %v1149_v5  ;;  %v1198_v61 = vpop.f32.mrb[34].mxu1 }
 0x90a   :  { %v1201_v59 = vadd.f32 %v1195_v16, %v3172_v14  ;;  %v1199_v13 = vpop.f32.mrb[35].mxu1 }
 0x90b   :  { %v1202_v17 = vadd.f32 %v1197_v21, %v3178_v45 }
 0x90c   :  { %v2295_v35 = vmul.f32 -1.442695, %v1201_v59 }
 0x90d   :  { %v2296_v48 = vmul.f32 -1.442695, %v1202_v17 }
 0x90e   :  { %2498 = vpow2.f32 %v2295_v35 }
 0x90f   :  { %2500 = vpow2.f32 %v2296_v48 }
 0x910   :  { %2502 = vtanh.f32 %v1202_v17 }
 0x915   :  { %v1271_v41 = vpop.f32.mrb[28].mxu0 }
 0x916   :  { %v1278_v39 = vadd.f32 %v1271_v41, %v257_v46  ;;  %v1273_v51 = vpop.f32.mrb[29].mxu0 }
 0x917   :  { %v1279_v28 = vadd.f32 %v1273_v51, %v259_v0  ;;  %v1275_v53 = vpop.f32.mrb[30].mxu0 }
 0x918   :  { %v2499_v52 = vpop.eup %2498  ;;  %v2298_v54 = vmul.f32 -1.442695, %v1278_v39  ;;  %v1276_v36 = vpop.f32.mrb[31].mxu0 }
 0x919   :  { %v2501_v56 = vpop.eup %2500  ;;  %v1211_v60 = vadd.f32 1.0, %v2499_v52  ;;  %v2299_v62 = vmul.f32 -1.442695, %v1279_v28  ;;  %v3374_v52 = vld [vmem:[#allocation9 + $0x14] ss:$8 sps:$4 sm:$0xff]  }
 0x91a   :  { %v1212_v47 = vadd.f32 1.0, %v2501_v56  ;;  %2504 = vpow2.f32 %v2298_v54  ;;  %v2503_v25 = vpop.eup %2502  ;;  %v3377_v54 = vld [vmem:[#allocation9 + $0x10] ss:$8 sps:$4 sm:$0xff]   ;;  %v3380_v36 = vld [vmem:[#allocation9 + $0x24] ss:$8 sps:$4 sm:$0xff]  }
 0x91b   :  { %2506 = vrcp.f32 %v1211_v60  ;;  %v3383_v56 = vld [vmem:[#allocation9 + $0x20] ss:$8 sps:$4 sm:$0xff]   ;;  %v3386_v60 = vld [vmem:[#allocation9 + $0x34] ss:$8 sps:$4 sm:$0xff]  }
 0x91c   :  { %2508 = vrcp.f32 %v1212_v47  ;;  %v3389_v47 = vld [vmem:[#allocation9 + $0x30] ss:$8 sps:$4 sm:$0xff]  }
 0x91d   :  { %2510 = vpow2.f32 %v2299_v62 }
 0x91e   :  { %2512 = vtanh.f32 %v1279_v28 }
 0x924   :  { %v2505_v33 = vpop.eup %2504 }
 0x925   :  { %v2507_v26 = vpop.eup %2506  ;;  %v1288_v8 = vadd.f32 1.0, %v2505_v33 }
 0x926   :  { %v2509_v50 = vpop.eup %2508  ;;  %v1219_v59 = vmul.f32 %v2507_v26, %v3300_v55 }
 0x927   :  { %v2511_v57 = vpop.eup %2510  ;;  %v1218_v5 = vsel %vm297_vm3, %v2503_v25, %v2509_v50 }
 0x928   :  { %v1289_v9 = vadd.f32 1.0, %v2511_v57  ;;  %v1220_v12 = vmul.f32 %v2507_v26, %v1218_v5  ;;  %v2513_v16 = vpop.eup %2512 }
 0x92a   :  { %2514 = vrcp.f32 %v1289_v9  ;;  %1222 = vrot.lane.b32.xlu0 %v1220_v12, %s2818_s19 }
 0x92b   :  { %2516 = vrcp.f32 %v1288_v8 }
 0x934   :  { %v2515_v18 = vpop.eup %2514 }
 0x935   :  { %v2517_v20 = vpop.eup %2516  ;;  %v1295_v21 = vsel %vm297_vm3, %v2513_v16, %v2515_v18 }
 0x936   :  { %v1297_v61 = vmul.f32 %v2517_v20, %v1295_v21  ;;  %v1296_v48 = vmul.f32 %v2517_v20, %v3304_v34  ;;  %v3370_v34 = vld [vmem:[#allocation9] ss:$8 sps:$4 sm:$0xff]  }
 0x938   :  { %1299 = vrot.lane.b32.xlu1 %v1297_v61, %s2818_s19 }
 0x99c   :  { %v1223_v13 = vpop.permute.xlu0 %1222 }
 0x99d   :  { %v3356_v17 = vadd.f32 %v1223_v13, %v1219_v59 }
 0x99f   :  { %2518 = vtanh.f32 %v3356_v17 }
 0x9a9   :  { %v2519_v35 = vpop.eup %2518 }
 0x9aa   :  { %v1300_v46 = vpop.permute.xlu1 %1299  ;;  %v3360_v0 = vmul.f32 %v2519_v35, %v1218_v5 }
 0x9ab   :  { %v3362_v41 = vadd.f32 %v1300_v46, %v1296_v48 }
 0x9ac   :  { %v1306_v39 = vpack.c.bf16 %v3360_v0, %v3360_v0 }
 0x9ad   :  { %2520 = vtanh.f32 %v3362_v41 }
 0x9ae   :  { %1308 = vrot.lane.b32.xlu0 %v1306_v39, %s2818_s19 }
 0x9b7   :  { %v2521_v55 = vpop.eup %2520 }
 0x9b8   :  { %v1304_v51 = vmul.f32 %v2521_v55, %v1295_v21 }
 0x9ba   :  { %v1305_v28 = vpack.c.bf16 %v1304_v51, %v1304_v51 }
 0x9bc   :  { %1355 = vrot.lane.b32.xlu1 %v1305_v28, %s2818_s19 }
 0xa20   :  { %v1309_v53 = vpop.permute.xlu0 %1308 }
 0xa21   :  { %2300 = vmatmul.mubr.msk.bf16.vlgmr.msra.gmra.mrb[36].mxu1 %vm349_vm2, %v1309_v53 }
 0xa22   :  { %1438 = vmatpush1.bf16.msra.mxu1 %v3370_v34  ;;  %1469 = vmatprep.mubr.bf16.mxu1 %v3730_v44 }
 0xa23   :  { %1439 = vmatprep.subr.bf16.mxu1 %v3374_v52 }
 0xa26   :  { %1440 = vmatpush1.bf16.msra.mxu1 %v3377_v54 }
 0xa27   :  { %1441 = vmatprep.subr.bf16.mxu1 %v3380_v36 }
 0xa2a   :  { %1442 = vmatpush1.bf16.msra.mxu1 %v3383_v56 }
 0xa2b   :  { %1443 = vmatprep.subr.bf16.mxu1 %v3386_v60 }
 0xa2e   :  { %v1356_v62 = vpop.permute.xlu1 %1355  ;;  %1444 = vmatpush1.bf16.msra.mxu1 %v3389_v47 }
 0xa2f   :  { %2301 = vmatmul.mubr.msk.bf16.vlgmr.msra.gmra.mrb[32].mxu0 %vm349_vm2, %v1356_v62  ;;  %1560 = vmatprep.subr.bf16.mxu1 %v3071_v4 }
 0xa30   :  { %1514 = vmatpush1.bf16.msra.mxu0 %v3066_v2  ;;  %1545 = vmatprep.mubr.bf16.mxu0 %v3730_v44  ;;  %v3410_v2 = vld [vmem:[#allocation9 + $0x4] ss:$8 sps:$4 sm:$0xff]  }
 0xa31   :  { %2304 = vmatmul.mubr.msk.bf16.vlgmr.msra.gmra.mrb[40].mxu1 %vm349_vm2, %v1356_v62  ;;  %1515 = vmatprep.subr.bf16.mxu0 %v3068_v3 }
 0xa32   :  { %1561 = vmatpush1.bf16.msra.mxu1 %v3076_v7  ;;  %1592 = vmatprep.mubr.bf16.mxu1 %v3730_v44 }
 0xa33   :  { %1562 = vmatprep.subr.bf16.mxu1 %v3078_v10 }
 0xa34   :  { %1516 = vmatpush1.bf16.msra.mxu0 %v3074_v6 }
 0xa35   :  { %1517 = vmatprep.subr.bf16.mxu0 %v3081_v11  ;;  %v261_v11 = vadd.f32 %v3025_v27, %v3048_v40 }
 0xa36   :  { %1563 = vmatpush1.bf16.msra.mxu1 %v3085_v15 }
 0xa37   :  { %1564 = vmatprep.subr.bf16.mxu1 %v3088_v19 }
 0xa38   :  { %1518 = vmatpush1.bf16.msra.mxu0 %v3091_v22  ;;  %v263_v22 = vadd.f32 %v3029_v29, %v3054_v42 }
 0xa39   :  { %1519 = vmatprep.subr.bf16.mxu0 %v3095_v23 }
 0xa3a   :  { %1565 = vmatpush1.bf16.msra.mxu1 %v3099_v24 }
 0xa3b   :  { %1566 = vmatprep.subr.bf16.mxu1 %v3102_v30 }
 0xa3c   :  { %1520 = vmatpush1.bf16.msra.mxu0 %v3105_v31 }
 0xa3d   :  { %1637 = vmatprep.subr.bf16.mxu0 %v3410_v2 }
 0xa3e   :  { %1567 = vmatpush1.bf16.msra.mxu1 %v3112_v43 }
 0xa3f   :  { %1713 = vmatprep.subr.bf16.mxu1 %v3064_v1 }
 0xaf4   :  { %v1347_v3 = vpop.f32.mrb[36].mxu1 }
 0xaf5   :  { %v1349_v4 = vpop.f32.mrb[37].mxu1 }
 0xaf6   :  { %v1351_v6 = vpop.f32.mrb[38].mxu1 }
 0xaf7   :  { %v1352_v7 = vpop.f32.mrb[39].mxu1 }
 0xb02   :  { %v1394_v10 = vpop.f32.mrb[32].mxu0 }
 0xb03   :  { %v1395_v15 = vadd.f32 %v1394_v10, %v1347_v3  ;;  %v1396_v19 = vpop.f32.mrb[33].mxu0 }
 0xb04   :  { %v1397_v23 = vadd.f32 %v1396_v19, %v1349_v4  ;;  %v1398_v24 = vpop.f32.mrb[34].mxu0  ;;  %v1471_v30 = vpop.f32.mrb[40].mxu1 }
 0xb05   :  { %v1401_v31 = vadd.f32 %v1395_v15, %v3172_v14  ;;  %v1478_v43 = vadd.f32 %v1471_v30, %v261_v11  ;;  %v1399_v1 = vpop.f32.mrb[35].mxu0  ;;  %v1473_v25 = vpop.f32.mrb[41].mxu1 }
 0xb06   :  { %v1402_v33 = vadd.f32 %v1397_v23, %v3178_v45  ;;  %v1479_v26 = vadd.f32 %v1473_v25, %v263_v22  ;;  %v1475_v50 = vpop.f32.mrb[42].mxu1  ;;  %v3455_v1 = vld [vmem:[#allocation12 + $0x10] ss:$8 sps:$4 sm:$0xff]   ;;  %v3459_v25 = vld [vmem:[#allocation12 + $0x24] ss:$8 sps:$4 sm:$0xff]  }
 0xb07   :  { %v2302_v57 = vmul.f32 -1.442695, %v1401_v31  ;;  %v2305_v8 = vmul.f32 -1.442695, %v1478_v43  ;;  %v1476_v27 = vpop.f32.mrb[43].mxu1 }
 0xb08   :  { %v2303_v5 = vmul.f32 -1.442695, %v1402_v33  ;;  %v2306_v9 = vmul.f32 -1.442695, %v1479_v26  ;;  %v3446_v31 = vld [vmem:[#allocation12] ss:$8 sps:$4 sm:$0xff]  }
 0xb09   :  { %2522 = vpow2.f32 %v2302_v57  ;;  %v3451_v43 = vld [vmem:[#allocation12 + $0x14] ss:$8 sps:$4 sm:$0xff]   ;;  %v3470_v50 = vld [vmem:[#allocation10 + $0x4] ss:$8 sps:$4 sm:$0xff]   ;;  %v3474_v57 = vld [vmem:[#allocation12 + $0x30] ss:$8 sps:$4 sm:$0xff]  }
 0xb0a   :  { %2524 = vpow2.f32 %v2303_v5  ;;  %v3481_v27 = vld [vmem:[#allocation10 + $0x14] ss:$8 sps:$4 sm:$0xff]   ;;  %v3485_v5 = vld [vmem:[#allocation10 + $0x10] ss:$8 sps:$4 sm:$0xff]  }
 0xb0b   :  { %2526 = vpow2.f32 %v2305_v8  ;;  %v3477_v8 = vld [vmem:[#allocation10] ss:$8 sps:$4 sm:$0xff]  }
 0xb0c   :  { %2528 = vpow2.f32 %v2306_v9  ;;  %v3488_v9 = vld [vmem:[#allocation10 + $0x24] ss:$8 sps:$4 sm:$0xff]  }
 0xb0d   :  { %2530 = vtanh.f32 %v1402_v33  ;;  %v3463_v33 = vld [vmem:[#allocation12 + $0x20] ss:$8 sps:$4 sm:$0xff]  }
 0xb13   :  { %v2523_v29 = vpop.eup %2522 }
 0xb14   :  { %v2525_v12 = vpop.eup %2524  ;;  %v1411_v16 = vadd.f32 1.0, %v2523_v29  ;;  %v3491_v29 = vld [vmem:[#allocation10 + $0x20] ss:$8 sps:$4 sm:$0xff]  }
 0xb15   :  { %v2527_v18 = vpop.eup %2526  ;;  %v1412_v20 = vadd.f32 1.0, %v2525_v12  ;;  %v3494_v12 = vld [vmem:[#allocation10 + $0x34] ss:$8 sps:$4 sm:$0xff]  }
 0xb16   :  { %v2529_v21 = vpop.eup %2528  ;;  %v1488_v61 = vadd.f32 1.0, %v2527_v18 }
 0xb17   :  { %2532 = vrcp.f32 %v1412_v20  ;;  %v1489_v59 = vadd.f32 1.0, %v2529_v21  ;;  %v2531_v13 = vpop.eup %2530 }
 0xb18   :  { %2534 = vrcp.f32 %v1411_v16  ;;  %v2645_v16 = vld [vmem:[#allocation12 + $0x4] ss:$8 sps:$4 sm:$0xff]  }
 0xb19   :  { %2536 = vtanh.f32 %v1479_v26  ;;  %v3467_v26 = vld [vmem:[#allocation12 + $0x34] ss:$8 sps:$4 sm:$0xff]  }
 0xb1a   :  { %2538 = vrcp.f32 %v1489_v59 }
 0xb1b   :  { %2540 = vrcp.f32 %v1488_v61 }
 0xb21   :  { %v2533_v35 = vpop.eup %2532 }
 0xb22   :  { %v2535_v48 = vpop.eup %2534  ;;  %v1418_v46 = vsel %vm297_vm3, %v2531_v13, %v2533_v35 }
 0xb23   :  { %v2537_v39 = vpop.eup %2536  ;;  %v1420_v55 = vmul.f32 %v2535_v48, %v1418_v46  ;;  %v1419_v3 = vmul.f32 %v2535_v48, %v3356_v17 }
 0xb24   :  { %v2539_v51 = vpop.eup %2538 }
 0xb25   :  { %v2541_v28 = vpop.eup %2540  ;;  %1422 = vrot.lane.b32.xlu0 %v1420_v55, %s2818_s19  ;;  %v1495_v53 = vsel %vm297_vm3, %v2537_v39, %v2539_v51 }
 0xb26   :  { %v1497_v62 = vmul.f32 %v2541_v28, %v1495_v53  ;;  %v1496_v7 = vmul.f32 %v2541_v28, %v3362_v41 }
 0xb28   :  { %1499 = vrot.lane.b32.xlu1 %v1497_v62, %s2818_s19  ;;  %v267_v62 = vadd.f32 %v3040_v37, %v3048_v40 }
 0xb97   :  { %v1423_v4 = vpop.permute.xlu0 %1422 }
 0xb98   :  { %v3428_v6 = vadd.f32 %v1423_v4, %v1419_v3  ;;  %v269_v3 = vadd.f32 %v3042_v38, %v3054_v42 }
 0xb9a   :  { %2542 = vtanh.f32 %v3428_v6  ;;  %v1500_v10 = vpop.permute.xlu1 %1499 }
 0xb9b   :  { %v3432_v11 = vadd.f32 %v1500_v10, %v1496_v7 }
 0xb9d   :  { %2544 = vtanh.f32 %v3432_v11 }
 0xba4   :  { %v2543_v15 = vpop.eup %2542 }
 0xba5   :  { %v3435_v19 = vmul.f32 %v2543_v15, %v1418_v46 }
 0xba7   :  { %v2545_v22 = vpop.eup %2544  ;;  %v1506_v23 = vpack.c.bf16 %v3435_v19, %v3435_v19 }
 0xba8   :  { %v1504_v17 = vmul.f32 %v2545_v22, %v1495_v53 }
 0xba9   :  { %1508 = vrot.lane.b32.xlu0 %v1506_v23, %s2818_s19 }
 0xbaa   :  { %v1505_v24 = vpack.c.bf16 %v1504_v17, %v1504_v17 }
 0xbac   :  { %1555 = vrot.lane.b32.xlu1 %v1505_v24, %s2818_s19 }
 0xc1b   :  { %v1509_v41 = vpop.permute.xlu0 %1508 }
 0xc1c   :  { %2307 = vmatmul.mubr.msk.bf16.vlgmr.msra.gmra.mrb[36].mxu0 %vm349_vm2, %v1509_v41 }
 0xc1d   :  { %1638 = vmatpush1.bf16.msra.mxu0 %v3370_v34  ;;  %1669 = vmatprep.mubr.bf16.mxu0 %v3730_v44 }
 0xc1e   :  { %v1556_v30 = vpop.permute.xlu1 %1555  ;;  %1639 = vmatprep.subr.bf16.mxu0 %v3374_v52 }
 0xc1f   :  { %2308 = vmatmul.mubr.msk.bf16.vlgmr.msra.gmra.mrb[44].mxu1 %vm349_vm2, %v1556_v30 }
 0xc20   :  { %1714 = vmatpush1.bf16.msra.mxu1 %v3446_v31  ;;  %1745 = vmatprep.mubr.bf16.mxu1 %v3730_v44 }
 0xc21   :  { %1640 = vmatpush1.bf16.msra.mxu0 %v3377_v54  ;;  %1715 = vmatprep.subr.bf16.mxu1 %v3451_v43 }
 0xc22   :  { %1641 = vmatprep.subr.bf16.mxu0 %v3380_v36 }
 0xc24   :  { %1716 = vmatpush1.bf16.msra.mxu1 %v3455_v1 }
 0xc25   :  { %1642 = vmatpush1.bf16.msra.mxu0 %v3383_v56  ;;  %1717 = vmatprep.subr.bf16.mxu1 %v3459_v25 }
 0xc26   :  { %1643 = vmatprep.subr.bf16.mxu0 %v3386_v60 }
 0xc28   :  { %1718 = vmatpush1.bf16.msra.mxu1 %v3463_v33 }
 0xc29   :  { %1644 = vmatpush1.bf16.msra.mxu0 %v3389_v47  ;;  %1719 = vmatprep.subr.bf16.mxu1 %v3467_v26 }
 0xc2a   :  { %1760 = vmatprep.subr.bf16.mxu0 %v3470_v50 }
 0xc2c   :  { %2311 = vmatmul.mubr.msk.bf16.vlgmr.msra.gmra.mrb[40].mxu0 %vm349_vm2, %v1556_v30  ;;  %1720 = vmatpush1.bf16.msra.mxu1 %v3474_v57 }
 0xc2d   :  { %1761 = vmatpush1.bf16.msra.mxu0 %v3477_v8  ;;  %1837 = vmatprep.subr.bf16.mxu1 %v3410_v2  ;;  %v3497_v2 = vld [vmem:[#allocation10 + $0x30] ss:$8 sps:$4 sm:$0xff]  }
 0xc2e   :  { %1762 = vmatprep.subr.bf16.mxu0 %v3481_v27  ;;  %1792 = vmatprep.mubr.bf16.mxu0 %v3730_v44 }
 0xc31   :  { %1763 = vmatpush1.bf16.msra.mxu0 %v3485_v5 }
 0xc32   :  { %1764 = vmatprep.subr.bf16.mxu0 %v3488_v9 }
 0xc35   :  { %1765 = vmatpush1.bf16.msra.mxu0 %v3491_v29 }
 0xc36   :  { %1766 = vmatprep.subr.bf16.mxu0 %v3494_v12 }
 0xc39   :  { %1767 = vmatpush1.bf16.msra.mxu0 %v3497_v2 }
 0xc3a   :  { %1913 = vmatprep.subr.bf16.mxu0 %v2645_v16 }
 0xcef   :  { %v1547_v18 = vpop.f32.mrb[36].mxu0 }
 0xcf0   :  { %v1549_v20 = vpop.f32.mrb[37].mxu0 }
 0xcf1   :  { %v1551_v21 = vpop.f32.mrb[38].mxu0 }
 0xcf2   :  { %v1594_v61 = vpop.f32.mrb[44].mxu1  ;;  %v1552_v59 = vpop.f32.mrb[39].mxu0 }
 0xcf3   :  { %v1595_v13 = vadd.f32 %v1594_v61, %v1547_v18  ;;  %v1596_v35 = vpop.f32.mrb[45].mxu1 }
 0xcf4   :  { %v1597_v48 = vadd.f32 %v1596_v35, %v1549_v20  ;;  %v1598_v46 = vpop.f32.mrb[46].mxu1 }
 0xcf5   :  { %v1601_v39 = vadd.f32 %v1595_v13, %v3172_v14  ;;  %v1599_v55 = vpop.f32.mrb[47].mxu1 }
 0xcf6   :  { %v1602_v51 = vadd.f32 %v1597_v48, %v3178_v45 }
 0xcf7   :  { %v2309_v28 = vmul.f32 -1.442695, %v1601_v39 }
 0xcf8   :  { %v2310_v53 = vmul.f32 -1.442695, %v1602_v51 }
 0xcf9   :  { %2546 = vpow2.f32 %v2309_v28 }
 0xcfa   :  { %2548 = vpow2.f32 %v2310_v53 }
 0xcff   :  { %v1671_v4 = vpop.f32.mrb[40].mxu0 }
 0xd00   :  { %v1678_v7 = vadd.f32 %v1671_v4, %v267_v62  ;;  %v1673_v10 = vpop.f32.mrb[41].mxu0 }
 0xd01   :  { %v1679_v15 = vadd.f32 %v1673_v10, %v269_v3  ;;  %v1675_v22 = vpop.f32.mrb[42].mxu0 }
 0xd02   :  { %v2312_v23 = vmul.f32 -1.442695, %v1678_v7  ;;  %v1676_v17 = vpop.f32.mrb[43].mxu0 }
 0xd03   :  { %v2547_v24 = vpop.eup %2546  ;;  %v2313_v41 = vmul.f32 -1.442695, %v1679_v15 }
 0xd04   :  { %v2549_v30 = vpop.eup %2548  ;;  %v1611_v16 = vadd.f32 1.0, %v2547_v24  ;;  %2550 = vpow2.f32 %v2312_v23 }
 0xd05   :  { %v1612_v18 = vadd.f32 1.0, %v2549_v30  ;;  %2552 = vpow2.f32 %v2313_v41 }
 0xd06   :  { %2554 = vtanh.f32 %v1602_v51 }
 0xd07   :  { %2556 = vrcp.f32 %v1612_v18 }
 0xd08   :  { %2558 = vrcp.f32 %v1611_v16 }
 0xd09   :  { %2560 = vtanh.f32 %v1679_v15 }
 0xd0e   :  { %v2551_v37 = vpop.eup %2550 }
 0xd0f   :  { %v2553_v20 = vpop.eup %2552  ;;  %v1688_v38 = vadd.f32 1.0, %v2551_v37 }
 0xd10   :  { %v2555_v21 = vpop.eup %2554  ;;  %v1689_v61 = vadd.f32 1.0, %v2553_v20 }
 0xd11   :  { %v2557_v59 = vpop.eup %2556 }
 0xd12   :  { %v2559_v13 = vpop.eup %2558  ;;  %2562 = vrcp.f32 %v1689_v61  ;;  %v1618_v35 = vsel %vm297_vm3, %v2555_v21, %v2557_v59 }
 0xd13   :  { %2564 = vrcp.f32 %v1688_v38  ;;  %v1620_v48 = vmul.f32 %v2559_v13, %v1618_v35  ;;  %v2561_v46 = vpop.eup %2560  ;;  %v1619_v53 = vmul.f32 %v2559_v13, %v3428_v6 }
 0xd15   :  { %1622 = vrot.lane.b32.xlu0 %v1620_v48, %s2818_s19 }
 0xd1c   :  { %v2563_v39 = vpop.eup %2562 }
 0xd1d   :  { %v2565_v55 = vpop.eup %2564  ;;  %v1695_v51 = vsel %vm297_vm3, %v2561_v46, %v2563_v39 }
 0xd1e   :  { %v1697_v28 = vmul.f32 %v2565_v55, %v1695_v51  ;;  %v1696_v4 = vmul.f32 %v2565_v55, %v3432_v11 }
 0xd20   :  { %1699 = vrot.lane.b32.xlu1 %v1697_v28, %s2818_s19 }
 0xd87   :  { %v1623_v62 = vpop.permute.xlu0 %1622 }
 0xd88   :  { %v3513_v3 = vadd.f32 %v1623_v62, %v1619_v53 }
 0xd8a   :  { %2566 = vtanh.f32 %v3513_v3 }
 0xd92   :  { %v1700_v7 = vpop.permute.xlu1 %1699 }
 0xd93   :  { %v3517_v10 = vadd.f32 %v1700_v7, %v1696_v4 }
 0xd94   :  { %v2567_v15 = vpop.eup %2566 }
 0xd95   :  { %2568 = vtanh.f32 %v3517_v10  ;;  %v3520_v22 = vmul.f32 %v2567_v15, %v1618_v35 }
 0xd97   :  { %v1706_v23 = vpack.c.bf16 %v3520_v22, %v3520_v22 }
 0xd99   :  { %1708 = vrot.lane.b32.xlu0 %v1706_v23, %s2818_s19 }
 0xd9f   :  { %v2569_v6 = vpop.eup %2568 }
 0xda0   :  { %v1704_v17 = vmul.f32 %v2569_v6, %v1695_v51 }
 0xda2   :  { %v1705_v24 = vpack.c.bf16 %v1704_v17, %v1704_v17 }
 0xda4   :  { %1755 = vrot.lane.b32.xlu1 %v1705_v24, %s2818_s19 }
 0xe0b   :  { %v1709_v41 = vpop.permute.xlu0 %1708 }
 0xe0c   :  { %2314 = vmatmul.mubr.msk.bf16.vlgmr.msra.gmra.mrb[48].mxu1 %vm349_vm2, %v1709_v41 }
 0xe0d   :  { %1838 = vmatpush1.bf16.msra.mxu1 %v3370_v34  ;;  %1869 = vmatprep.mubr.bf16.mxu1 %v3730_v44 }
 0xe0e   :  { %1839 = vmatprep.subr.bf16.mxu1 %v3374_v52 }
 0xe11   :  { %1840 = vmatpush1.bf16.msra.mxu1 %v3377_v54 }
 0xe12   :  { %1841 = vmatprep.subr.bf16.mxu1 %v3380_v36 }
 0xe15   :  { %1842 = vmatpush1.bf16.msra.mxu1 %v3383_v56 }
 0xe16   :  { %1843 = vmatprep.subr.bf16.mxu1 %v3386_v60  ;;  %v1756_v11 = vpop.permute.xlu1 %1755 }
 0xe17   :  { %2315 = vmatmul.mubr.msk.bf16.vlgmr.msra.gmra.mrb[44].mxu0 %vm349_vm2, %v1756_v11 }
 0xe18   :  { %1914 = vmatpush1.bf16.msra.mxu0 %v3446_v31  ;;  %1945 = vmatprep.mubr.bf16.mxu0 %v3730_v44 }
 0xe19   :  { %1844 = vmatpush1.bf16.msra.mxu1 %v3389_v47  ;;  %1915 = vmatprep.subr.bf16.mxu0 %v3451_v43 }
 0xe1a   :  { %1960 = vmatprep.subr.bf16.mxu1 %v3470_v50  ;;  %v3732_v50 = vld [vmem:[#allocation22_spill] sm:$0xff] }
 0xe1c   :  { %2318 = vmatmul.mubr.msk.bf16.vlgmr.msra.gmra.mrb[52].mxu1 %vm349_vm2, %v1756_v11  ;;  %1916 = vmatpush1.bf16.msra.mxu0 %v3455_v1 }
 0xe1d   :  { %1961 = vmatpush1.bf16.msra.mxu1 %v3477_v8  ;;  %1917 = vmatprep.subr.bf16.mxu0 %v3459_v25  ;;  %v3731_v25 = vld [vmem:[#allocation21_spill] sm:$0xff] }
 0xe1e   :  { %1962 = vmatprep.subr.bf16.mxu1 %v3481_v27  ;;  %1992 = vmatprep.mubr.bf16.mxu1 %v3730_v44 }
 0xe20   :  { %1918 = vmatpush1.bf16.msra.mxu0 %v3463_v33  ;;  %v271_v33 = vadd.f32 %v3731_v25, %v3048_v40 }
 0xe21   :  { %1963 = vmatpush1.bf16.msra.mxu1 %v3485_v5  ;;  %1919 = vmatprep.subr.bf16.mxu0 %v3467_v26 }
 0xe22   :  { %1964 = vmatprep.subr.bf16.mxu1 %v3488_v9 }
 0xe24   :  { %1920 = vmatpush1.bf16.msra.mxu0 %v3474_v57  ;;  %v273_v57 = vadd.f32 %v3732_v50, %v3054_v42 }
 0xe25   :  { %1965 = vmatpush1.bf16.msra.mxu1 %v3491_v29 }
 0xe26   :  { %1966 = vmatprep.subr.bf16.mxu1 %v3494_v12 }
 0xe29   :  { %1967 = vmatpush1.bf16.msra.mxu1 %v3497_v2 }
 0xedf   :  { %v1747_v34 = vpop.f32.mrb[48].mxu1 }
 0xee0   :  { %v1749_v52 = vpop.f32.mrb[49].mxu1 }
 0xee1   :  { %v1751_v54 = vpop.f32.mrb[50].mxu1 }
 0xee2   :  { %v1752_v44 = vpop.f32.mrb[51].mxu1 }
 0xeea   :  { %v1794_v36 = vpop.f32.mrb[44].mxu0 }
 0xeeb   :  { %v1795_v56 = vadd.f32 %v1794_v36, %v1747_v34  ;;  %v1796_v60 = vpop.f32.mrb[45].mxu0 }
 0xeec   :  { %v1797_v47 = vadd.f32 %v1796_v60, %v1749_v52  ;;  %v1798_v31 = vpop.f32.mrb[46].mxu0 }
 0xeed   :  { %v1801_v43 = vadd.f32 %v1795_v56, %v3172_v14  ;;  %v1799_v1 = vpop.f32.mrb[47].mxu0 }
 0xeee   :  { %v1802_v26 = vadd.f32 %v1797_v47, %v3178_v45 }
 0xeef   :  { %v2316_v8 = vmul.f32 -1.442695, %v1801_v43  ;;  %v1871_v27 = vpop.f32.mrb[52].mxu1 }
 0xef0   :  { %v2317_v5 = vmul.f32 -1.442695, %v1802_v26  ;;  %v1878_v9 = vadd.f32 %v1871_v27, %v271_v33  ;;  %v1873_v29 = vpop.f32.mrb[53].mxu1 }
 0xef1   :  { %2570 = vpow2.f32 %v2316_v8  ;;  %v1879_v12 = vadd.f32 %v1873_v29, %v273_v57  ;;  %v1875_v2 = vpop.f32.mrb[54].mxu1 }
 0xef2   :  { %2572 = vpow2.f32 %v2317_v5  ;;  %v2319_v30 = vmul.f32 -1.442695, %v1878_v9  ;;  %v1876_v16 = vpop.f32.mrb[55].mxu1 }
 0xef3   :  { %v2320_v18 = vmul.f32 -1.442695, %v1879_v12  ;;  %v2412_v16 = vld [vmem:[%s3721_s9 + $0x10] sm:$0xff]  }
 0xef4   :  { %2574 = vpow2.f32 %v2319_v30  ;;  %v2410_v30 = vld [vmem:[%s3721_s9] sm:$0xff]  }
 0xef5   :  { %2576 = vpow2.f32 %v2320_v18  ;;  %2342 = vmatprep.subr.bf16.mxu0 %v2410_v30 }
 0xef6   :  { %2578 = vtanh.f32 %v1802_v26 }
 0xefb   :  { %v2571_v40 = vpop.eup %2570 }
 0xefc   :  { %v2573_v37 = vpop.eup %2572  ;;  %v1811_v20 = vadd.f32 1.0, %v2571_v40 }
 0xefd   :  { %v1812_v38 = vadd.f32 1.0, %v2573_v37 }
 0xefe   :  { %v2575_v21 = vpop.eup %2574 }
 0xeff   :  { %v2577_v42 = vpop.eup %2576  ;;  %2580 = vrcp.f32 %v1812_v38  ;;  %v1888_v61 = vadd.f32 1.0, %v2575_v21  ;;  %v2413_v38 = vld [vmem:[%s3721_s9 + $0x18] sm:$0xff]  }
 0xf00   :  { %2582 = vrcp.f32 %v1811_v20  ;;  %v1889_v59 = vadd.f32 1.0, %v2577_v42  ;;  %v2579_v13 = vpop.eup %2578 }
 0xf01   :  { %2584 = vtanh.f32 %v1879_v12 }
 0xf02   :  { %2586 = vrcp.f32 %v1889_v59 }
 0xf03   :  { %2588 = vrcp.f32 %v1888_v61 }
 0xf09   :  { %v2581_v35 = vpop.eup %2580 }
 0xf0a   :  { %v2583_v48 = vpop.eup %2582  ;;  %v1818_v46 = vsel %vm297_vm3, %v2579_v13, %v2581_v35 }
 0xf0b   :  { %v2585_v39 = vpop.eup %2584  ;;  %v1820_v55 = vmul.f32 %v2583_v48, %v1818_v46  ;;  %v1819_v4 = vmul.f32 %v2583_v48, %v3513_v3 }
 0xf0c   :  { %v2587_v51 = vpop.eup %2586 }
 0xf0d   :  { %v2589_v28 = vpop.eup %2588  ;;  %1822 = vrot.lane.b32.xlu0 %v1820_v55, %s2818_s19  ;;  %v1895_v53 = vsel %vm297_vm3, %v2585_v39, %v2587_v51 }
 0xf0e   :  { %v1897_v62 = vmul.f32 %v2589_v28, %v1895_v53  ;;  %v1896_v23 = vmul.f32 %v2589_v28, %v3517_v10 }
 0xf10   :  { %1899 = vrot.lane.b32.xlu1 %v1897_v62, %s2818_s19 }
 0xf7f   :  { %v1823_v7 = vpop.permute.xlu0 %1822 }
 0xf80   :  { %v3567_v15 = vadd.f32 %v1823_v7, %v1819_v4 }
 0xf82   :  { %2590 = vtanh.f32 %v3567_v15  ;;  %v1900_v6 = vpop.permute.xlu1 %1899 }
 0xf83   :  { %v3571_v17 = vadd.f32 %v1900_v6, %v1896_v23 }
 0xf85   :  { %2592 = vtanh.f32 %v3571_v17 }
 0xf8c   :  { %v2591_v24 = vpop.eup %2590 }
 0xf8d   :  { %v1827_v41 = vmul.f32 %v2591_v24, %v1818_v46 }
 0xf8f   :  { %v2593_v11 = vpop.eup %2592  ;;  %v1906_v34 = vpack.c.bf16 %v1827_v41, %v1827_v41 }
 0xf90   :  { %v1904_v52 = vmul.f32 %v2593_v11, %v1895_v53 }
 0xf91   :  { %1908 = vrot.lane.b32.xlu0 %v1906_v34, %s2818_s19 }
 0xf92   :  { %v1905_v3 = vpack.c.bf16 %v1904_v52, %v1904_v52 }
 0xf94   :  { %1955 = vrot.lane.b32.xlu1 %v1905_v3, %s2818_s19 }
 0xf98   :  { %630 = vrot.lane.b32.xlu1 %v3195_v63, %s2818_s19 }
 0xf9c   :  { %1029 = vrot.lane.b32.xlu1 %v3307_v32, %s2818_s19 }
 0xfa0   :  { %1429 = vrot.lane.b32.xlu1 %v3435_v19, %s2818_s19 }
 0xfa4   :  { %1829 = vrot.lane.b32.xlu1 %v1827_v41, %s2818_s19 }
 0xfa8   :  { %2035 = vrot.lane.b32.xlu1 %v1904_v52, %s2818_s19 }
0x1003   :  { %v1909_v10 = vpop.permute.xlu0 %1908 }
0x1004   :  { %2321 = vmatmul.mubr.msk.bf16.vlgmr.msra.gmra.mrb[48].mxu0 %vm349_vm2, %v1909_v10 }
0x1005   :  { %2343 = vmatpush3.bf16.msra.mxu0 %v2410_v30 }
0x1006   :  { %v1956_v54 = vpop.permute.xlu1 %1955 }
0x1007   :  { %2322 = vmatmul.mubr.msk.bf16.vlgmr.msra.gmra.mrb[56].mxu1 %vm349_vm2, %v1956_v54 }
0x100a   :  { %v631_v44 = vpop.permute.xlu1 %630 }
0x100b   :  { %633 = vst.msk [vmem:[#allocation3] sm:$0xff] %vm349_vm2, %v631_v44 }
0x100e   :  { %v1030_v63 = vpop.permute.xlu1 %1029 }
0x100f   :  { %1033 = vst.msk [vmem:[#allocation3 + $0x10] sm:$0xff] %vm349_vm2, %v1030_v63 }
0x1012   :  { %v1430_v32 = vpop.permute.xlu1 %1429  ;;  %v2052_v13 = vld [vmem:[#allocation3] sm:$0xff] }
0x1013   :  { %1433 = vst.msk [vmem:[#allocation3 + $0x20] sm:$0xff] %vm349_vm2, %v1430_v32 }
0x1016   :  { %v1830_v19 = vpop.permute.xlu1 %1829  ;;  %v2054_v46 = vld [vmem:[#allocation3 + $0x10] sm:$0xff] }
0x1017   :  { %1833 = vst.msk [vmem:[#allocation3 + $0x30] sm:$0xff] %vm349_vm2, %v1830_v19 }
0x101a   :  { %v2036_v36 = vpop.permute.xlu1 %2035  ;;  %v2056_v51 = vld [vmem:[#allocation3 + $0x20] sm:$0xff] }
0x101b   :  { %2038 = vst.msk [vmem:[#allocation13] sm:$0xff] %vm349_vm2, %v2036_v36 }
0x10d7   :  { %v1947_v56 = vpop.f32.mrb[48].mxu0 }
0x10d8   :  { %v1949_v60 = vpop.f32.mrb[49].mxu0 }
0x10d9   :  { %v1951_v47 = vpop.f32.mrb[50].mxu0 }
0x10da   :  { %v1994_v31 = vpop.f32.mrb[56].mxu1  ;;  %v1952_v43 = vpop.f32.mrb[51].mxu0 }
0x10db   :  { %v1995_v1 = vadd.f32 %v1994_v31, %v1947_v56  ;;  %v1996_v25 = vpop.f32.mrb[57].mxu1 }
0x10dc   :  { %v1997_v33 = vadd.f32 %v1996_v25, %v1949_v60  ;;  %v1998_v26 = vpop.f32.mrb[58].mxu1 }
0x10dd   :  { %v2001_v50 = vadd.f32 %v1995_v1, %v3172_v14  ;;  %v1999_v57 = vpop.f32.mrb[59].mxu1  ;;  %v2411_v14 = vld [vmem:[%s3721_s9 + $0x8] sm:$0xff]  }
0x10de   :  { %v2002_v8 = vadd.f32 %v1997_v33, %v3178_v45  ;;  %2344 = vmatprep.subr.bf16.mxu0 %v2411_v14 }
0x10df   :  { %v2323_v27 = vmul.f32 -1.442695, %v2001_v50  ;;  %2345 = vmatpush3.bf16.msra.mxu0 %v2411_v14 }
0x10e0   :  { %v2324_v5 = vmul.f32 -1.442695, %v2002_v8  ;;  %2346 = vmatprep.subr.bf16.mxu0 %v2412_v16 }
0x10e1   :  { %2594 = vpow2.f32 %v2323_v27 }
0x10e2   :  { %2596 = vpow2.f32 %v2324_v5 }
0x10e3   :  { %2598 = vtanh.f32 %v2002_v8  ;;  %2347 = vmatpush3.bf16.msra.mxu0 %v2412_v16 }
0x10e4   :  { %2348 = vmatprep.subr.bf16.mxu0 %v2413_v38 }
0x10e7   :  { %2349 = vmatpush3.bf16.msra.mxu0 %v2413_v38 }
0x10eb   :  { %v2595_v9 = vpop.eup %2594 }
0x10ec   :  { %v2597_v29 = vpop.eup %2596  ;;  %v2011_v12 = vadd.f32 1.0, %v2595_v9 }
0x10ed   :  { %v2012_v2 = vadd.f32 1.0, %v2597_v29  ;;  %v2599_v45 = vpop.eup %2598 }
0x10ef   :  { %2600 = vrcp.f32 %v2012_v2 }
0x10f0   :  { %2602 = vrcp.f32 %v2011_v12 }
0x10f9   :  { %v2601_v18 = vpop.eup %2600 }
0x10fa   :  { %v2603_v40 = vpop.eup %2602  ;;  %v2018_v37 = vsel %vm297_vm3, %v2599_v45, %v2601_v18 }
0x10fb   :  { %v2020_v20 = vmul.f32 %v2603_v40, %v2018_v37  ;;  %v2019_v58 = vmul.f32 %v2603_v40, %v3567_v15  ;;  %v2058_v15 = vld [vmem:[#allocation3 + $0x30] sm:$0xff] }
0x10fd   :  { %2022 = vrot.lane.b32.xlu0 %v2020_v20, %s2818_s19 }
0x1101   :  { %829 = vrot.lane.b32.xlu0 %v3248_v49, %s2818_s19 }
0x1105   :  { %1229 = vrot.lane.b32.xlu0 %v3360_v0, %s2818_s19 }
0x1109   :  { %1629 = vrot.lane.b32.xlu0 %v3520_v22, %s2818_s19 }
0x116f   :  { %v2023_v21 = vpop.permute.xlu0 %2022 }
0x1170   :  { %v2025_v42 = vadd.f32 %v2023_v21, %v2019_v58 }
0x1172   :  { %2604 = vtanh.f32 %v2025_v42  ;;  %2047 = vrot.lane.b32.xlu1 %v2025_v42, %s2818_s19 }
0x1173   :  { %v830_v61 = vpop.permute.xlu0 %829 }
0x1174   :  { %833 = vst.msk [vmem:[#allocation3 + $0x8] sm:$0xff] %vm349_vm2, %v830_v61 }
0x1177   :  { %v1230_v59 = vpop.permute.xlu0 %1229 }
0x1178   :  { %1233 = vst.msk [vmem:[#allocation3 + $0x18] sm:$0xff] %vm349_vm2, %v1230_v59 }
0x117b   :  { %v1630_v49 = vpop.permute.xlu0 %1629  ;;  %v2053_v35 = vld [vmem:[#allocation3 + $0x8] sm:$0xff] }
0x117c   :  { %v2605_v0 = vpop.eup %2604  ;;  %1633 = vst.msk [vmem:[#allocation3 + $0x28] sm:$0xff] %vm349_vm2, %v1630_v49  ;;  %v2060_v22 = vpack.c.bf16 %v2053_v35, %v2052_v13 }
0x117d   :  { %v2027_v48 = vmul.f32 %v2605_v0, %v2018_v37 }
0x117e   :  { %2350 = vmatprep.mubr.msk.bf16.mxu0 %vm349_vm2, %v2060_v22 }
0x117f   :  { %2029 = vrot.lane.b32.xlu0 %v2027_v48, %s2818_s19  ;;  %v2055_v39 = vld [vmem:[#allocation3 + $0x18] sm:$0xff] }
0x1180   :  { %v2061_v55 = vpack.c.bf16 %v2055_v39, %v2054_v46 }
0x1182   :  { %2351 = vmatmul.mubr.msk.bf16.vlgmr.msra.gmra.mrb[52].mxu0 %vm349_vm2, %v2061_v55 }
0x1183   :  { %2042 = vrot.lane.b32.xlu0 %v3571_v17, %s2818_s19  ;;  %v2057_v28 = vld [vmem:[#allocation3 + $0x28] sm:$0xff]  ;;  %v3633_v17 = vld [vmem:[%s3722_s10] ss:$0 sm:$0xff]  ;;  %s2820_s10 = smov [#allocation14]  }
0x1184   :  { %v2062_v53 = vpack.c.bf16 %v2057_v28, %v2056_v51  ;;  %s2216_s7 = sshll.u32 %s2820_s10, 4  ;;  %s3639_s7 = int_to_ptr.vmem [resolvable:$true] %s2216_s7 }
0x1186   :  { %2354 = vmatprep.mubr.msk.bf16.mxu0 %vm349_vm2, %v2062_v53 }
0x11e4   :  { %v2048_v62 = vpop.permute.xlu1 %2047 }
0x11e5   :  { %2051 = vst.msk [vmem:[#allocation14 + $0x8] sm:$0xff] %vm349_vm2, %v2048_v62 }
0x11f1   :  { %v2030_v4 = vpop.permute.xlu0 %2029 }
0x11f2   :  { %2033 = vst.msk [vmem:[#allocation3 + $0x38] sm:$0xff] %vm349_vm2, %v2030_v4  ;;  %2040 = vst.msk [vmem:[#allocation13 + $0x8] sm:$0xff] %vm349_vm2, %v2030_v4 }
0x11f5   :  { %v2043_v7 = vpop.permute.xlu0 %2042 }
0x11f6   :  { %2045 = vst.msk [vmem:[#allocation14] sm:$0xff] %vm349_vm2, %v2043_v7 }
0x11f9   :  { %v2059_v23 = vld [vmem:[#allocation3 + $0x38] sm:$0xff] }
0x11fa   :  { %v2063_v6 = vpack.c.bf16 %v2059_v23, %v2058_v15 }
0x11fc   :  { %2355 = vmatmul.mubr.msk.bf16.gmra.mrb[56].mxu0 %vm349_vm2, %v2063_v6 }
0x1255   :  { %v2352_v24 = vpop.f32.mrb[52].mxu0 }
0x1256   :  { %v2158_v41 = vadd.f32 %v2352_v24, %v3633_v17  ;;  %v2149_v11 = vpop.f32.mrb[53].mxu0 }
0x1257   :  { %v2150_v34 = vadd.f32 %v3633_v17, %v2149_v11  ;;  %v2353_v52 = vpop.f32.mrb[54].mxu0 }
0x1258   :  { %2606 = vtanh.f32 %v2158_v41  ;;  %v2161_v3 = vadd.f32 %v2353_v52, %v3633_v17  ;;  %v2152_v10 = vpop.f32.mrb[55].mxu0 }
0x1259   :  { %2608 = vtanh.f32 %v2150_v34  ;;  %v2153_v54 = vadd.f32 %v3633_v17, %v2152_v10 }
0x125a   :  { %2610 = vtanh.f32 %v2161_v3 }
0x125b   :  { %2612 = vtanh.f32 %v2153_v54 }
0x125c   :  { %2767 = shalt.err (!%p2764_p2)
}
0x125d   :  { %s2768_s24 = scalar_lea.hbm %s3724_s12, 256 }
0x125e   :  { %p2769_p3 = scmp.ne.s32.totalorder %s3724_s12, %s2768_s24  ;;  %p2772_p4 = scmp.lt.u32.totalorder %s2768_s24, %s3724_s12 }
0x1260   :  { %p2774_p5 = pnand %p2772_p4, %p2769_p3 }
0x1262   :  { %2777 = shalt.err (!%p2774_p5)
}
0x1263   :  { %2210 = dma.vmem_to_hbm [thread:$0]  %s2205_s22, 256, %s3724_s12, [#allocation6], %s2812_s20, %s2812_s20, %s2813_s21  }
0x1264   :  { %s2778_s2 = scalar_lea.vmem %s3639_s7, 256  ;;  %p2783_p7 = scmp.lt.s32.totalorder %s3639_s7, %s3639_s7 }
0x1265   :  { %p2779_p6 = scmp.ne.s32.totalorder %s3639_s7, %s2778_s2  ;;  %p2784_p8 = scmp.lt.s32.totalorder %s2778_s2, %s2778_s2 }
0x1267   :  { %p2785_p9 = por %p2784_p8, %p2783_p7 }
0x1269   :  { %p2786_p10 = pnand %p2785_p9, %p2779_p6 }
0x126b   :  { %2789 = shalt.err (!%p2786_p10)
}
0x126c   :  { %s2790_s30 = scalar_lea.hbm %s3725_s13, 256 }
0x126d   :  { %p2791_p11 = scmp.ne.s32.totalorder %s3725_s13, %s2790_s30  ;;  %p2794_p12 = scmp.lt.u32.totalorder %s2790_s30, %s3725_s13 }
0x126f   :  { %p2796_p13 = pnand %p2794_p12, %p2791_p11 }
0x1271   :  { %2799 = shalt.err (!%p2796_p13)
}
0x1272   :  { %2222 = dma.vmem_to_hbm [thread:$0]  %s3639_s7, 256, %s3725_s13, [#allocation15], %s2812_s20, %s2812_s20, %s2813_s21   ;;  %v2607_v44 = vpop.eup %2606 }
0x1273   :  { %v2609_v63 = vpop.eup %2608  ;;  %2191 = vst.msk [vmem:[%s3723_s11 + $0x10] sm:$0xff] %vm2188_vm4, %v2607_v44 }
0x1274   :  { %v2611_v32 = vpop.eup %2610  ;;  %2189 = vst.msk [vmem:[%s3723_s11] sm:$0xff] %vm2188_vm4, %v2609_v63 }
0x1275   :  { %v2613_v19 = vpop.eup %2612  ;;  %2192 = vst.msk [vmem:[%s3723_s11 + $0x18] sm:$0xff] %vm2188_vm4, %v2611_v32 }
0x1276   :  { %2190 = vst.msk [vmem:[%s3723_s11 + $0x8] sm:$0xff] %vm2188_vm4, %v2613_v19 }
0x12cf   :  { %v2356_v36 = vpop.f32.mrb[56].mxu0 }
0x12d0   :  { %v2174_v56 = vadd.f32 %v2356_v36, %v3633_v17  ;;  %v2165_v60 = vpop.f32.mrb[57].mxu0 }
0x12d1   :  { %v2166_v47 = vadd.f32 %v3633_v17, %v2165_v60  ;;  %v2357_v31 = vpop.f32.mrb[58].mxu0 }
0x12d2   :  { %2614 = vtanh.f32 %v2174_v56  ;;  %v2177_v43 = vadd.f32 %v2357_v31, %v3633_v17  ;;  %v2168_v1 = vpop.f32.mrb[59].mxu0 }
0x12d3   :  { %2616 = vtanh.f32 %v2166_v47  ;;  %v2169_v25 = vadd.f32 %v3633_v17, %v2168_v1 }
0x12d4   :  { %2618 = vtanh.f32 %v2177_v43 }
0x12d5   :  { %2620 = vtanh.f32 %v2169_v25 }
0x12dc   :  { %v2615_v33 = vpop.eup %2614 }
0x12dd   :  { %v2617_v26 = vpop.eup %2616  ;;  %2195 = vst.msk [vmem:[%s3723_s11 + $0x30] sm:$0xff] %vm2188_vm4, %v2615_v33 }
0x12de   :  { %v2619_v50 = vpop.eup %2618  ;;  %2193 = vst.msk [vmem:[%s3723_s11 + $0x20] sm:$0xff] %vm2188_vm4, %v2617_v26 }
0x12df   :  { %v2621_v57 = vpop.eup %2620  ;;  %2196 = vst.msk [vmem:[%s3723_s11 + $0x38] sm:$0xff] %vm2188_vm4, %v2619_v50 }
0x12e0   :  { %2194 = vst.msk [vmem:[%s3723_s11 + $0x28] sm:$0xff] %vm2188_vm4, %v2621_v57 }
0x12e1   :  { %2806 = dma.done.wait [#allocation6], 256  }
0x12e2   :  { %2807 = vsyncadd [#allocation6], 4294967040 }
0x12e3   :  { %2808 = dma.done.wait [#allocation15], 256  }
0x12e4   :  { %2809 = vsyncadd [#allocation15], 4294967040 }
0x12e5   :  { %2231 = vsyncpa [#allocation5], 1 }
0x12e6   :  { %2232 = vsyncpa [#allocation8], 1 }
0x12e7   :  { %2233 = vsyncpa [#allocation11], 1 }
0x12e8   :  { %2234 = vsyncpa [#allocation6], 1 }
0x12e9   :  { %2235 = vsyncpa [#allocation15], 1 }

</bundles_post_ra>
